<compile_context>
chip_gen: v5e
topology: v5e:2x2
jax: 0.10.0
libtpu: 0.0.40
codegen_flags: <defaults>
</compile_context>

<pallas_src>
import jax
import jax.numpy as jnp
from jax.experimental import pallas as pl
from jax.experimental.pallas import tpu as pltpu

BN_EPS = 1e-5


def _conv_tap_masks(n, h, w):
    """(9, 1, N*H*W) f32 validity masks, tap order k = ky*3 + kx.

    Row k is 1.0 at flat positions (n, y, x) whose (y+dy, x+dx) neighbour lies
    inside the image (dy=ky-1, dx=kx-1) and 0.0 otherwise.  Multiplying the
    lane-rolled activation by this mask reproduces Conv2d's zero padding and
    also kills any cross-image wrap-around of the circular roll.
    Computed once at the XLA boundary (constant-foldable, ~18 KiB)."""
    y_idx = jnp.arange(h, dtype=jnp.int32).reshape(h, 1)
    x_idx = jnp.arange(w, dtype=jnp.int32).reshape(1, w)
    rows = []
    for ky in range(3):
        for kx in range(3):
            dy, dx = ky - 1, kx - 1
            ok = jnp.ones((h, w), jnp.float32)
            if dy < 0:
                ok = ok * (y_idx > 0)
            if dy > 0:
                ok = ok * (y_idx < h - 1)
            if dx < 0:
                ok = ok * (x_idx > 0)
            if dx > 0:
                ok = ok * (x_idx < w - 1)
            rows.append(jnp.tile(ok.reshape(-1), n).reshape(1, n * h * w))
    return jnp.stack(rows, axis=0)


def _conv3x3_bn_relu_stage(x_cl, w_ref, mask_ref, gamma, beta, w_img):
    """One Conv3x3(pad=1, no bias) + BatchNorm2d(train) + ReLU stage.

    x_cl     : (Cin, L) f32 value, L = N*H*W (channel-major, spatial-minor).
    w_ref    : (9, Cout, Cin) per-tap weights, tap order k = ky*3 + kx.
    mask_ref : (9, 1, L) f32 per-tap edge masks.
    gamma, beta : (Cout, 1) BN affine parameters.
    Returns (Cout, L) f32 activations after BN + ReLU.
    """
    _, l = x_cl.shape
    cout = w_ref.shape[1]

    acc = jnp.zeros((cout, l), jnp.float32)
    for ky in range(3):
        for kx in range(3):
            dy, dx = ky - 1, kx - 1
            k = ky * 3 + kx
            s = dy * w_img + dx                     # flat spatial shift of tap
            if s == 0:
                p = x_cl                            # centre tap: no roll, no mask
            else:
                # p[:, f] = x[:, (f + s) mod L]  -- XLU lane rotation
                p = pltpu.roll(x_cl, shift=(-s) % l, axis=1)
                p = p * mask_ref[k]                 # zero padding at the borders
            acc = acc + jnp.dot(w_ref[k], p,
                                preferred_element_type=jnp.float32)

    # BatchNorm2d (training mode): centred two-pass variance over the resident
    # accumulator (avoids E[x^2]-E[x]^2 cancellation), folded into one FMA+ReLU.
    # The conv bias is omitted on purpose: the mean subtraction cancels it.
    inv_m = 1.0 / float(l)
    mean = jnp.sum(acc, axis=1, keepdims=True) * inv_m            # (Cout, 1)
    centered = acc - mean
    var = jnp.sum(centered * centered, axis=1, keepdims=True) * inv_m
    scale = gamma * jax.lax.rsqrt(var + BN_EPS)                   # (Cout, 1)
    return jnp.maximum(centered * scale + beta, 0.0)              # (Cout, L)


def pix2pix_conv_block_decoder_forward(x_nchw, params):
    """Full module forward.  Input/output are NCHW like the PyTorch module."""
    n, cin, h, w = x_nchw.shape
    c1 = params["w1"].shape[0]
    c2 = params["w2"].shape[0]
    l = n * h * w

    # Layout glue at the XLA boundary (cheap): NCHW -> (C, N*H*W) activations,
    # OIHW -> (9, Cout, Cin) per-tap weights, per-tap edge masks.
    x_cl = jnp.transpose(x_nchw, (1, 0, 2, 3)).reshape(cin, l).astype(jnp.float32)
    w1 = jnp.transpose(params["w1"], (2, 3, 0, 1)).reshape(9, c1, cin).astype(jnp.float32)
    w2 = jnp.transpose(params["w2"], (2, 3, 0, 1)).reshape(9, c2, c1).astype(jnp.float32)
    g1 = params["g1"].reshape(c1, 1).astype(jnp.float32)
    be1 = params["beta1"].reshape(c1, 1).astype(jnp.float32)
    g2 = params["g2"].reshape(c2, 1).astype(jnp.float32)
    be2 = params["beta2"].reshape(c2, 1).astype(jnp.float32)
    masks = _conv_tap_masks(n, h, w)
    # Conv biases b1/b2 are NOT passed: train-mode BatchNorm's mean subtraction
    # cancels a per-channel constant exactly.

    def kernel(x_ref, mask_ref, w1_ref, g1_ref, be1_ref, w2_ref, g2_ref,
               be2_ref, out_ref):
        y1 = _conv3x3_bn_relu_stage(x_ref[...], w1_ref, mask_ref,
                                    g1_ref[...], be1_ref[...], w)
        # Stage-2 input stays in vregs/VMEM, already in the (C, L) layout.
        y2 = _conv3x3_bn_relu_stage(y1, w2_ref, mask_ref,
                                    g2_ref[...], be2_ref[...], w)
        out_ref[...] = y2        # (C2, N*H*W): lane-dense, unmasked stores

    vmem = pl.BlockSpec(memory_space=pltpu.MemorySpace.VMEM)
    flops = 2 * l * 9 * (cin * c1 + c1 * c2)
    bytes_accessed = 4 * (cin * l + 9 * l + 9 * c1 * cin + 9 * c2 * c1
                          + 2 * (c1 + c2) + c2 * l)

    y = pl.pallas_call(
        kernel,
        out_shape=jax.ShapeDtypeStruct((c2, l), jnp.float32),
        in_specs=[vmem] * 8,
        out_specs=vmem,
        cost_estimate=pl.CostEstimate(flops=flops,
                                      transcendentals=c1 + c2,
                                      bytes_accessed=bytes_accessed),
    )(x_cl, masks, w1, g1, be1, w2, g2, be2)

    # (C2, N*H*W) -> NCHW at the boundary (cheap XLA reshape/transpose).
    return jnp.transpose(y.reshape(c2, n, h, w), (1, 0, 2, 3))


def init_params(key, in_channels, base_channels):
    """Deterministic parameter init (PyTorch-like uniform bounds for convs)."""
    k = jax.random.split(key, 8)

    def conv_init(kw, kb, cout, cin):
        bound = 1.0 / jnp.sqrt(cin * 9.0)
        w = jax.random.uniform(kw, (cout, cin, 3, 3), jnp.float32, -bound, bound)
        b = jax.random.uniform(kb, (cout,), jnp.float32, -bound, bound)
        return w, b

    w1, b1 = conv_init(k[0], k[1], base_channels, in_channels)
    w2, b2 = conv_init(k[2], k[3], base_channels * 2, base_channels)
    g1 = 1.0 + 0.1 * jax.random.normal(k[4], (base_channels,), jnp.float32)
    beta1 = 0.1 * jax.random.normal(k[5], (base_channels,), jnp.float32)
    g2 = 1.0 + 0.1 * jax.random.normal(k[6], (base_channels * 2,), jnp.float32)
    beta2 = 0.1 * jax.random.normal(k[7], (base_channels * 2,), jnp.float32)
    return dict(w1=w1, b1=b1, g1=g1, beta1=beta1,
                w2=w2, b2=b2, g2=g2, beta2=beta2)


def _reference_forward(x, params):
    """Pure-JAX reference (matches PyTorch train-mode forward, WITH conv bias)."""
    def conv(x, w, b):
        y = jax.lax.conv_general_dilated(
            x, w, window_strides=(1, 1), padding="SAME",
            dimension_numbers=("NCHW", "OIHW", "NCHW"))
        return y + b[None, :, None, None]

    def bn(x, g, be):
        mean = jnp.mean(x, axis=(0, 2, 3), keepdims=True)
        var = jnp.mean((x - mean) ** 2, axis=(0, 2, 3), keepdims=True)
        return ((x - mean) * jax.lax.rsqrt(var + BN_EPS)
                * g[None, :, None, None] + be[None, :, None, None])

    y = jnp.maximum(bn(conv(x, params["w1"], params["b1"]),
                       params["g1"], params["beta1"]), 0.0)
    y = jnp.maximum(bn(conv(y, params["w2"], params["b2"]),
                       params["g2"], params["beta2"]), 0.0)
    return y


if __name__ == "__main__":
    # Small shapes consistent with the module: N=2, in_channels=4, H=W=16,
    # base_channels=8  =>  output (2, 16, 16, 16) in NCHW.
    N, Cin, H, W = 2, 4, 16, 16
    base_channels = 8

    key = jax.random.PRNGKey(0)
    kx, kp = jax.random.split(key)
    x = jax.random.normal(kx, (N, Cin, H, W), jnp.float32)
    params = init_params(kp, Cin, base_channels)

    out = jax.block_until_ready(pix2pix_conv_block_decoder_forward(x, params))
    ref = jax.block_until_ready(_reference_forward(x, params))

    assert out.shape == (N, 2 * base_channels, H, W), out.shape
    assert jnp.allclose(out, ref, atol=1e-4, rtol=1e-4), float(
        jnp.max(jnp.abs(out - ref)))

    print("KERNEL_OK")
</pallas_src>

<mosaic_0001>
module attributes {stable_mosaic.version = 11 : i64} {
  func.func @kernel(%arg0: memref<4x512xf32, #tpu.memory_space<vmem>>, %arg1: memref<9x1x512xf32, #tpu.memory_space<vmem>>, %arg2: memref<9x8x4xf32, #tpu.memory_space<vmem>>, %arg3: memref<8x1xf32, #tpu.memory_space<vmem>>, %arg4: memref<8x1xf32, #tpu.memory_space<vmem>>, %arg5: memref<9x16x8xf32, #tpu.memory_space<vmem>>, %arg6: memref<16x1xf32, #tpu.memory_space<vmem>>, %arg7: memref<16x1xf32, #tpu.memory_space<vmem>>, %arg8: memref<16x512xf32, #tpu.memory_space<vmem>>) attributes {dimension_semantics = [], scalar_prefetch = 0 : i64, scratch_operands = 0 : i64, tpu.core_type = #tpu.core_type<tc>} {
    %c0 = arith.constant 0 : index
    %c0_0 = arith.constant 0 : index
    %0 = vector.load %arg0[%c0, %c0_0] : memref<4x512xf32, #tpu.memory_space<vmem>>, vector<4x512xf32>
    %c0_1 = arith.constant 0 : index
    %c0_2 = arith.constant 0 : index
    %1 = vector.load %arg3[%c0_1, %c0_2] : memref<8x1xf32, #tpu.memory_space<vmem>>, vector<8x1xf32>
    %c0_3 = arith.constant 0 : index
    %c0_4 = arith.constant 0 : index
    %2 = vector.load %arg4[%c0_3, %c0_4] : memref<8x1xf32, #tpu.memory_space<vmem>>, vector<8x1xf32>
    %cst = arith.constant 0.000000e+00 : f32
    %3 = vector.broadcast %cst : f32 to vector<8x512xf32>
    %c17_i32 = arith.constant 17 : i32
    %4 = tpu.dynamic_rotate %0 by %c17_i32 dim 1 : vector<4x512xf32>, i32 -> vector<4x512xf32>
    %c0_5 = arith.constant 0 : index
    %c0_6 = arith.constant 0 : index
    %c0_7 = arith.constant 0 : index
    %5 = vector.load %arg1[%c0_5, %c0_6, %c0_7] : memref<9x1x512xf32, #tpu.memory_space<vmem>>, vector<1x1x512xf32>
    %6 = vector.shape_cast %5 : vector<1x1x512xf32> to vector<1x512xf32>
    %7 = vector.broadcast %6 : vector<1x512xf32> to vector<4x512xf32>
    %8 = arith.mulf %4, %7 : vector<4x512xf32>
    %c0_8 = arith.constant 0 : index
    %c0_9 = arith.constant 0 : index
    %c0_10 = arith.constant 0 : index
    %9 = vector.load %arg2[%c0_8, %c0_9, %c0_10] : memref<9x8x4xf32, #tpu.memory_space<vmem>>, vector<1x8x4xf32>
    %10 = vector.shape_cast %9 : vector<1x8x4xf32> to vector<8x4xf32>
    %cst_11 = arith.constant dense<0.000000e+00> : vector<8x512xf32>
    %11 = tpu.matmul %10, %8, %cst_11 {dimension_numbers = #tpu.dot_dimension_numbers<[1], [0], [0], [1], [0, 0, 1, 1], [], []>} : vector<8x4xf32>, vector<4x512xf32>, vector<8x512xf32> -> vector<8x512xf32>
    %12 = arith.addf %3, %11 : vector<8x512xf32>
    %c16_i32 = arith.constant 16 : i32
    %13 = tpu.dynamic_rotate %0 by %c16_i32 dim 1 : vector<4x512xf32>, i32 -> vector<4x512xf32>
    %c1 = arith.constant 1 : index
    %c0_12 = arith.constant 0 : index
    %c0_13 = arith.constant 0 : index
    %14 = vector.load %arg1[%c1, %c0_12, %c0_13] : memref<9x1x512xf32, #tpu.memory_space<vmem>>, vector<1x1x512xf32>
    %15 = vector.shape_cast %14 : vector<1x1x512xf32> to vector<1x512xf32>
    %16 = vector.broadcast %15 : vector<1x512xf32> to vector<4x512xf32>
    %17 = arith.mulf %13, %16 : vector<4x512xf32>
    %c1_14 = arith.constant 1 : index
    %c0_15 = arith.constant 0 : index
    %c0_16 = arith.constant 0 : index
    %18 = vector.load %arg2[%c1_14, %c0_15, %c0_16] : memref<9x8x4xf32, #tpu.memory_space<vmem>>, vector<1x8x4xf32>
    %19 = vector.shape_cast %18 : vector<1x8x4xf32> to vector<8x4xf32>
    %cst_17 = arith.constant dense<0.000000e+00> : vector<8x512xf32>
    %20 = tpu.matmul %19, %17, %cst_17 {dimension_numbers = #tpu.dot_dimension_numbers<[1], [0], [0], [1], [0, 0, 1, 1], [], []>} : vector<8x4xf32>, vector<4x512xf32>, vector<8x512xf32> -> vector<8x512xf32>
    %21 = arith.addf %12, %20 : vector<8x512xf32>
    %c15_i32 = arith.constant 15 : i32
    %22 = tpu.dynamic_rotate %0 by %c15_i32 dim 1 : vector<4x512xf32>, i32 -> vector<4x512xf32>
    %c2 = arith.constant 2 : index
    %c0_18 = arith.constant 0 : index
    %c0_19 = arith.constant 0 : index
    %23 = vector.load %arg1[%c2, %c0_18, %c0_19] : memref<9x1x512xf32, #tpu.memory_space<vmem>>, vector<1x1x512xf32>
    %24 = vector.shape_cast %23 : vector<1x1x512xf32> to vector<1x512xf32>
    %25 = vector.broadcast %24 : vector<1x512xf32> to vector<4x512xf32>
    %26 = arith.mulf %22, %25 : vector<4x512xf32>
    %c2_20 = arith.constant 2 : index
    %c0_21 = arith.constant 0 : index
    %c0_22 = arith.constant 0 : index
    %27 = vector.load %arg2[%c2_20, %c0_21, %c0_22] : memref<9x8x4xf32, #tpu.memory_space<vmem>>, vector<1x8x4xf32>
    %28 = vector.shape_cast %27 : vector<1x8x4xf32> to vector<8x4xf32>
    %cst_23 = arith.constant dense<0.000000e+00> : vector<8x512xf32>
    %29 = tpu.matmul %28, %26, %cst_23 {dimension_numbers = #tpu.dot_dimension_numbers<[1], [0], [0], [1], [0, 0, 1, 1], [], []>} : vector<8x4xf32>, vector<4x512xf32>, vector<8x512xf32> -> vector<8x512xf32>
    %30 = arith.addf %21, %29 : vector<8x512xf32>
    %c1_i32 = arith.constant 1 : i32
    %31 = tpu.dynamic_rotate %0 by %c1_i32 dim 1 : vector<4x512xf32>, i32 -> vector<4x512xf32>
    %c3 = arith.constant 3 : index
    %c0_24 = arith.constant 0 : index
    %c0_25 = arith.constant 0 : index
    %32 = vector.load %arg1[%c3, %c0_24, %c0_25] : memref<9x1x512xf32, #tpu.memory_space<vmem>>, vector<1x1x512xf32>
    %33 = vector.shape_cast %32 : vector<1x1x512xf32> to vector<1x512xf32>
    %34 = vector.broadcast %33 : vector<1x512xf32> to vector<4x512xf32>
    %35 = arith.mulf %31, %34 : vector<4x512xf32>
    %c3_26 = arith.constant 3 : index
    %c0_27 = arith.constant 0 : index
    %c0_28 = arith.constant 0 : index
    %36 = vector.load %arg2[%c3_26, %c0_27, %c0_28] : memref<9x8x4xf32, #tpu.memory_space<vmem>>, vector<1x8x4xf32>
    %37 = vector.shape_cast %36 : vector<1x8x4xf32> to vector<8x4xf32>
    %cst_29 = arith.constant dense<0.000000e+00> : vector<8x512xf32>
    %38 = tpu.matmul %37, %35, %cst_29 {dimension_numbers = #tpu.dot_dimension_numbers<[1], [0], [0], [1], [0, 0, 1, 1], [], []>} : vector<8x4xf32>, vector<4x512xf32>, vector<8x512xf32> -> vector<8x512xf32>
    %39 = arith.addf %30, %38 : vector<8x512xf32>
    %c4 = arith.constant 4 : index
    %c0_30 = arith.constant 0 : index
    %c0_31 = arith.constant 0 : index
    %40 = vector.load %arg2[%c4, %c0_30, %c0_31] : memref<9x8x4xf32, #tpu.memory_space<vmem>>, vector<1x8x4xf32>
    %41 = vector.shape_cast %40 : vector<1x8x4xf32> to vector<8x4xf32>
    %cst_32 = arith.constant dense<0.000000e+00> : vector<8x512xf32>
    %42 = tpu.matmul %41, %0, %cst_32 {dimension_numbers = #tpu.dot_dimension_numbers<[1], [0], [0], [1], [0, 0, 1, 1], [], []>} : vector<8x4xf32>, vector<4x512xf32>, vector<8x512xf32> -> vector<8x512xf32>
    %43 = arith.addf %39, %42 : vector<8x512xf32>
    %c511_i32 = arith.constant 511 : i32
    %44 = tpu.dynamic_rotate %0 by %c511_i32 dim 1 : vector<4x512xf32>, i32 -> vector<4x512xf32>
    %c5 = arith.constant 5 : index
    %c0_33 = arith.constant 0 : index
    %c0_34 = arith.constant 0 : index
    %45 = vector.load %arg1[%c5, %c0_33, %c0_34] : memref<9x1x512xf32, #tpu.memory_space<vmem>>, vector<1x1x512xf32>
    %46 = vector.shape_cast %45 : vector<1x1x512xf32> to vector<1x512xf32>
    %47 = vector.broadcast %46 : vector<1x512xf32> to vector<4x512xf32>
    %48 = arith.mulf %44, %47 : vector<4x512xf32>
    %c5_35 = arith.constant 5 : index
    %c0_36 = arith.constant 0 : index
    %c0_37 = arith.constant 0 : index
    %49 = vector.load %arg2[%c5_35, %c0_36, %c0_37] : memref<9x8x4xf32, #tpu.memory_space<vmem>>, vector<1x8x4xf32>
    %50 = vector.shape_cast %49 : vector<1x8x4xf32> to vector<8x4xf32>
    %cst_38 = arith.constant dense<0.000000e+00> : vector<8x512xf32>
    %51 = tpu.matmul %50, %48, %cst_38 {dimension_numbers = #tpu.dot_dimension_numbers<[1], [0], [0], [1], [0, 0, 1, 1], [], []>} : vector<8x4xf32>, vector<4x512xf32>, vector<8x512xf32> -> vector<8x512xf32>
    %52 = arith.addf %43, %51 : vector<8x512xf32>
    %c497_i32 = arith.constant 497 : i32
    %53 = tpu.dynamic_rotate %0 by %c497_i32 dim 1 : vector<4x512xf32>, i32 -> vector<4x512xf32>
    %c6 = arith.constant 6 : index
    %c0_39 = arith.constant 0 : index
    %c0_40 = arith.constant 0 : index
    %54 = vector.load %arg1[%c6, %c0_39, %c0_40] : memref<9x1x512xf32, #tpu.memory_space<vmem>>, vector<1x1x512xf32>
    %55 = vector.shape_cast %54 : vector<1x1x512xf32> to vector<1x512xf32>
    %56 = vector.broadcast %55 : vector<1x512xf32> to vector<4x512xf32>
    %57 = arith.mulf %53, %56 : vector<4x512xf32>
    %c6_41 = arith.constant 6 : index
    %c0_42 = arith.constant 0 : index
    %c0_43 = arith.constant 0 : index
    %58 = vector.load %arg2[%c6_41, %c0_42, %c0_43] : memref<9x8x4xf32, #tpu.memory_space<vmem>>, vector<1x8x4xf32>
    %59 = vector.shape_cast %58 : vector<1x8x4xf32> to vector<8x4xf32>
    %cst_44 = arith.constant dense<0.000000e+00> : vector<8x512xf32>
    %60 = tpu.matmul %59, %57, %cst_44 {dimension_numbers = #tpu.dot_dimension_numbers<[1], [0], [0], [1], [0, 0, 1, 1], [], []>} : vector<8x4xf32>, vector<4x512xf32>, vector<8x512xf32> -> vector<8x512xf32>
    %61 = arith.addf %52, %60 : vector<8x512xf32>
    %c496_i32 = arith.constant 496 : i32
    %62 = tpu.dynamic_rotate %0 by %c496_i32 dim 1 : vector<4x512xf32>, i32 -> vector<4x512xf32>
    %c7 = arith.constant 7 : index
    %c0_45 = arith.constant 0 : index
    %c0_46 = arith.constant 0 : index
    %63 = vector.load %arg1[%c7, %c0_45, %c0_46] : memref<9x1x512xf32, #tpu.memory_space<vmem>>, vector<1x1x512xf32>
    %64 = vector.shape_cast %63 : vector<1x1x512xf32> to vector<1x512xf32>
    %65 = vector.broadcast %64 : vector<1x512xf32> to vector<4x512xf32>
    %66 = arith.mulf %62, %65 : vector<4x512xf32>
    %c7_47 = arith.constant 7 : index
    %c0_48 = arith.constant 0 : index
    %c0_49 = arith.constant 0 : index
    %67 = vector.load %arg2[%c7_47, %c0_48, %c0_49] : memref<9x8x4xf32, #tpu.memory_space<vmem>>, vector<1x8x4xf32>
    %68 = vector.shape_cast %67 : vector<1x8x4xf32> to vector<8x4xf32>
    %cst_50 = arith.constant dense<0.000000e+00> : vector<8x512xf32>
    %69 = tpu.matmul %68, %66, %cst_50 {dimension_numbers = #tpu.dot_dimension_numbers<[1], [0], [0], [1], [0, 0, 1, 1], [], []>} : vector<8x4xf32>, vector<4x512xf32>, vector<8x512xf32> -> vector<8x512xf32>
    %70 = arith.addf %61, %69 : vector<8x512xf32>
    %c495_i32 = arith.constant 495 : i32
    %71 = tpu.dynamic_rotate %0 by %c495_i32 dim 1 : vector<4x512xf32>, i32 -> vector<4x512xf32>
    %c8 = arith.constant 8 : index
    %c0_51 = arith.constant 0 : index
    %c0_52 = arith.constant 0 : index
    %72 = vector.load %arg1[%c8, %c0_51, %c0_52] : memref<9x1x512xf32, #tpu.memory_space<vmem>>, vector<1x1x512xf32>
    %73 = vector.shape_cast %72 : vector<1x1x512xf32> to vector<1x512xf32>
    %74 = vector.broadcast %73 : vector<1x512xf32> to vector<4x512xf32>
    %75 = arith.mulf %71, %74 : vector<4x512xf32>
    %c8_53 = arith.constant 8 : index
    %c0_54 = arith.constant 0 : index
    %c0_55 = arith.constant 0 : index
    %76 = vector.load %arg2[%c8_53, %c0_54, %c0_55] : memref<9x8x4xf32, #tpu.memory_space<vmem>>, vector<1x8x4xf32>
    %77 = vector.shape_cast %76 : vector<1x8x4xf32> to vector<8x4xf32>
    %cst_56 = arith.constant dense<0.000000e+00> : vector<8x512xf32>
    %78 = tpu.matmul %77, %75, %cst_56 {dimension_numbers = #tpu.dot_dimension_numbers<[1], [0], [0], [1], [0, 0, 1, 1], [], []>} : vector<8x4xf32>, vector<4x512xf32>, vector<8x512xf32> -> vector<8x512xf32>
    %79 = arith.addf %70, %78 : vector<8x512xf32>
    %cst_57 = arith.constant dense<0.000000e+00> : vector<8xf32>
    %80 = vector.multi_reduction <add>, %79, %cst_57 [1] : vector<8x512xf32> to vector<8xf32>
    %81 = vector.shape_cast %80 : vector<8xf32> to vector<8x1xf32>
    %cst_58 = arith.constant 0.001953125 : f32
    %82 = vector.broadcast %cst_58 : f32 to vector<8x1xf32>
    %83 = arith.mulf %81, %82 : vector<8x1xf32>
    %84 = vector.broadcast %83 : vector<8x1xf32> to vector<8x512xf32>
    %85 = arith.subf %79, %84 : vector<8x512xf32>
    %86 = arith.mulf %85, %85 : vector<8x512xf32>
    %cst_59 = arith.constant dense<0.000000e+00> : vector<8xf32>
    %87 = vector.multi_reduction <add>, %86, %cst_59 [1] : vector<8x512xf32> to vector<8xf32>
    %88 = vector.shape_cast %87 : vector<8xf32> to vector<8x1xf32>
    %cst_60 = arith.constant 0.001953125 : f32
    %89 = vector.broadcast %cst_60 : f32 to vector<8x1xf32>
    %90 = arith.mulf %88, %89 : vector<8x1xf32>
    %cst_61 = arith.constant 9.99999974E-6 : f32
    %91 = vector.broadcast %cst_61 : f32 to vector<8x1xf32>
    %92 = arith.addf %90, %91 : vector<8x1xf32>
    %93 = math.rsqrt %92 : vector<8x1xf32>
    %94 = arith.mulf %1, %93 : vector<8x1xf32>
    %95 = vector.broadcast %94 : vector<8x1xf32> to vector<8x512xf32>
    %96 = arith.mulf %85, %95 : vector<8x512xf32>
    %97 = vector.broadcast %2 : vector<8x1xf32> to vector<8x512xf32>
    %98 = arith.addf %96, %97 : vector<8x512xf32>
    %cst_62 = arith.constant 0.000000e+00 : f32
    %99 = vector.broadcast %cst_62 : f32 to vector<8x512xf32>
    %100 = arith.maximumf %98, %99 : vector<8x512xf32>
    %c0_63 = arith.constant 0 : index
    %c0_64 = arith.constant 0 : index
    %101 = vector.load %arg6[%c0_63, %c0_64] : memref<16x1xf32, #tpu.memory_space<vmem>>, vector<16x1xf32>
    %c0_65 = arith.constant 0 : index
    %c0_66 = arith.constant 0 : index
    %102 = vector.load %arg7[%c0_65, %c0_66] : memref<16x1xf32, #tpu.memory_space<vmem>>, vector<16x1xf32>
    %cst_67 = arith.constant 0.000000e+00 : f32
    %103 = vector.broadcast %cst_67 : f32 to vector<16x512xf32>
    %c17_i32_68 = arith.constant 17 : i32
    %104 = tpu.dynamic_rotate %100 by %c17_i32_68 dim 1 : vector<8x512xf32>, i32 -> vector<8x512xf32>
    %c0_69 = arith.constant 0 : index
    %c0_70 = arith.constant 0 : index
    %c0_71 = arith.constant 0 : index
    %105 = vector.load %arg1[%c0_69, %c0_70, %c0_71] : memref<9x1x512xf32, #tpu.memory_space<vmem>>, vector<1x1x512xf32>
    %106 = vector.shape_cast %105 : vector<1x1x512xf32> to vector<1x512xf32>
    %107 = vector.broadcast %106 : vector<1x512xf32> to vector<8x512xf32>
    %108 = arith.mulf %104, %107 : vector<8x512xf32>
    %c0_72 = arith.constant 0 : index
    %c0_73 = arith.constant 0 : index
    %c0_74 = arith.constant 0 : index
    %109 = vector.load %arg5[%c0_72, %c0_73, %c0_74] : memref<9x16x8xf32, #tpu.memory_space<vmem>>, vector<1x16x8xf32>
    %110 = vector.shape_cast %109 : vector<1x16x8xf32> to vector<16x8xf32>
    %cst_75 = arith.constant dense<0.000000e+00> : vector<16x512xf32>
    %111 = tpu.matmul %110, %108, %cst_75 {dimension_numbers = #tpu.dot_dimension_numbers<[1], [0], [0], [1], [0, 0, 1, 1], [], []>} : vector<16x8xf32>, vector<8x512xf32>, vector<16x512xf32> -> vector<16x512xf32>
    %112 = arith.addf %103, %111 : vector<16x512xf32>
    %c16_i32_76 = arith.constant 16 : i32
    %113 = tpu.dynamic_rotate %100 by %c16_i32_76 dim 1 : vector<8x512xf32>, i32 -> vector<8x512xf32>
    %c1_77 = arith.constant 1 : index
    %c0_78 = arith.constant 0 : index
    %c0_79 = arith.constant 0 : index
    %114 = vector.load %arg1[%c1_77, %c0_78, %c0_79] : memref<9x1x512xf32, #tpu.memory_space<vmem>>, vector<1x1x512xf32>
    %115 = vector.shape_cast %114 : vector<1x1x512xf32> to vector<1x512xf32>
    %116 = vector.broadcast %115 : vector<1x512xf32> to vector<8x512xf32>
    %117 = arith.mulf %113, %116 : vector<8x512xf32>
    %c1_80 = arith.constant 1 : index
    %c0_81 = arith.constant 0 : index
    %c0_82 = arith.constant 0 : index
    %118 = vector.load %arg5[%c1_80, %c0_81, %c0_82] : memref<9x16x8xf32, #tpu.memory_space<vmem>>, vector<1x16x8xf32>
    %119 = vector.shape_cast %118 : vector<1x16x8xf32> to vector<16x8xf32>
    %cst_83 = arith.constant dense<0.000000e+00> : vector<16x512xf32>
    %120 = tpu.matmul %119, %117, %cst_83 {dimension_numbers = #tpu.dot_dimension_numbers<[1], [0], [0], [1], [0, 0, 1, 1], [], []>} : vector<16x8xf32>, vector<8x512xf32>, vector<16x512xf32> -> vector<16x512xf32>
    %121 = arith.addf %112, %120 : vector<16x512xf32>
    %c15_i32_84 = arith.constant 15 : i32
    %122 = tpu.dynamic_rotate %100 by %c15_i32_84 dim 1 : vector<8x512xf32>, i32 -> vector<8x512xf32>
    %c2_85 = arith.constant 2 : index
    %c0_86 = arith.constant 0 : index
    %c0_87 = arith.constant 0 : index
    %123 = vector.load %arg1[%c2_85, %c0_86, %c0_87] : memref<9x1x512xf32, #tpu.memory_space<vmem>>, vector<1x1x512xf32>
    %124 = vector.shape_cast %123 : vector<1x1x512xf32> to vector<1x512xf32>
    %125 = vector.broadcast %124 : vector<1x512xf32> to vector<8x512xf32>
    %126 = arith.mulf %122, %125 : vector<8x512xf32>
    %c2_88 = arith.constant 2 : index
    %c0_89 = arith.constant 0 : index
    %c0_90 = arith.constant 0 : index
    %127 = vector.load %arg5[%c2_88, %c0_89, %c0_90] : memref<9x16x8xf32, #tpu.memory_space<vmem>>, vector<1x16x8xf32>
    %128 = vector.shape_cast %127 : vector<1x16x8xf32> to vector<16x8xf32>
    %cst_91 = arith.constant dense<0.000000e+00> : vector<16x512xf32>
    %129 = tpu.matmul %128, %126, %cst_91 {dimension_numbers = #tpu.dot_dimension_numbers<[1], [0], [0], [1], [0, 0, 1, 1], [], []>} : vector<16x8xf32>, vector<8x512xf32>, vector<16x512xf32> -> vector<16x512xf32>
    %130 = arith.addf %121, %129 : vector<16x512xf32>
    %c1_i32_92 = arith.constant 1 : i32
    %131 = tpu.dynamic_rotate %100 by %c1_i32_92 dim 1 : vector<8x512xf32>, i32 -> vector<8x512xf32>
    %c3_93 = arith.constant 3 : index
    %c0_94 = arith.constant 0 : index
    %c0_95 = arith.constant 0 : index
    %132 = vector.load %arg1[%c3_93, %c0_94, %c0_95] : memref<9x1x512xf32, #tpu.memory_space<vmem>>, vector<1x1x512xf32>
    %133 = vector.shape_cast %132 : vector<1x1x512xf32> to vector<1x512xf32>
    %134 = vector.broadcast %133 : vector<1x512xf32> to vector<8x512xf32>
    %135 = arith.mulf %131, %134 : vector<8x512xf32>
    %c3_96 = arith.constant 3 : index
    %c0_97 = arith.constant 0 : index
    %c0_98 = arith.constant 0 : index
    %136 = vector.load %arg5[%c3_96, %c0_97, %c0_98] : memref<9x16x8xf32, #tpu.memory_space<vmem>>, vector<1x16x8xf32>
    %137 = vector.shape_cast %136 : vector<1x16x8xf32> to vector<16x8xf32>
    %cst_99 = arith.constant dense<0.000000e+00> : vector<16x512xf32>
    %138 = tpu.matmul %137, %135, %cst_99 {dimension_numbers = #tpu.dot_dimension_numbers<[1], [0], [0], [1], [0, 0, 1, 1], [], []>} : vector<16x8xf32>, vector<8x512xf32>, vector<16x512xf32> -> vector<16x512xf32>
    %139 = arith.addf %130, %138 : vector<16x512xf32>
    %c4_100 = arith.constant 4 : index
    %c0_101 = arith.constant 0 : index
    %c0_102 = arith.constant 0 : index
    %140 = vector.load %arg5[%c4_100, %c0_101, %c0_102] : memref<9x16x8xf32, #tpu.memory_space<vmem>>, vector<1x16x8xf32>
    %141 = vector.shape_cast %140 : vector<1x16x8xf32> to vector<16x8xf32>
    %cst_103 = arith.constant dense<0.000000e+00> : vector<16x512xf32>
    %142 = tpu.matmul %141, %100, %cst_103 {dimension_numbers = #tpu.dot_dimension_numbers<[1], [0], [0], [1], [0, 0, 1, 1], [], []>} : vector<16x8xf32>, vector<8x512xf32>, vector<16x512xf32> -> vector<16x512xf32>
    %143 = arith.addf %139, %142 : vector<16x512xf32>
    %c511_i32_104 = arith.constant 511 : i32
    %144 = tpu.dynamic_rotate %100 by %c511_i32_104 dim 1 : vector<8x512xf32>, i32 -> vector<8x512xf32>
    %c5_105 = arith.constant 5 : index
    %c0_106 = arith.constant 0 : index
    %c0_107 = arith.constant 0 : index
    %145 = vector.load %arg1[%c5_105, %c0_106, %c0_107] : memref<9x1x512xf32, #tpu.memory_space<vmem>>, vector<1x1x512xf32>
    %146 = vector.shape_cast %145 : vector<1x1x512xf32> to vector<1x512xf32>
    %147 = vector.broadcast %146 : vector<1x512xf32> to vector<8x512xf32>
    %148 = arith.mulf %144, %147 : vector<8x512xf32>
    %c5_108 = arith.constant 5 : index
    %c0_109 = arith.constant 0 : index
    %c0_110 = arith.constant 0 : index
    %149 = vector.load %arg5[%c5_108, %c0_109, %c0_110] : memref<9x16x8xf32, #tpu.memory_space<vmem>>, vector<1x16x8xf32>
    %150 = vector.shape_cast %149 : vector<1x16x8xf32> to vector<16x8xf32>
    %cst_111 = arith.constant dense<0.000000e+00> : vector<16x512xf32>
    %151 = tpu.matmul %150, %148, %cst_111 {dimension_numbers = #tpu.dot_dimension_numbers<[1], [0], [0], [1], [0, 0, 1, 1], [], []>} : vector<16x8xf32>, vector<8x512xf32>, vector<16x512xf32> -> vector<16x512xf32>
    %152 = arith.addf %143, %151 : vector<16x512xf32>
    %c497_i32_112 = arith.constant 497 : i32
    %153 = tpu.dynamic_rotate %100 by %c497_i32_112 dim 1 : vector<8x512xf32>, i32 -> vector<8x512xf32>
    %c6_113 = arith.constant 6 : index
    %c0_114 = arith.constant 0 : index
    %c0_115 = arith.constant 0 : index
    %154 = vector.load %arg1[%c6_113, %c0_114, %c0_115] : memref<9x1x512xf32, #tpu.memory_space<vmem>>, vector<1x1x512xf32>
    %155 = vector.shape_cast %154 : vector<1x1x512xf32> to vector<1x512xf32>
    %156 = vector.broadcast %155 : vector<1x512xf32> to vector<8x512xf32>
    %157 = arith.mulf %153, %156 : vector<8x512xf32>
    %c6_116 = arith.constant 6 : index
    %c0_117 = arith.constant 0 : index
    %c0_118 = arith.constant 0 : index
    %158 = vector.load %arg5[%c6_116, %c0_117, %c0_118] : memref<9x16x8xf32, #tpu.memory_space<vmem>>, vector<1x16x8xf32>
    %159 = vector.shape_cast %158 : vector<1x16x8xf32> to vector<16x8xf32>
    %cst_119 = arith.constant dense<0.000000e+00> : vector<16x512xf32>
    %160 = tpu.matmul %159, %157, %cst_119 {dimension_numbers = #tpu.dot_dimension_numbers<[1], [0], [0], [1], [0, 0, 1, 1], [], []>} : vector<16x8xf32>, vector<8x512xf32>, vector<16x512xf32> -> vector<16x512xf32>
    %161 = arith.addf %152, %160 : vector<16x512xf32>
    %c496_i32_120 = arith.constant 496 : i32
    %162 = tpu.dynamic_rotate %100 by %c496_i32_120 dim 1 : vector<8x512xf32>, i32 -> vector<8x512xf32>
    %c7_121 = arith.constant 7 : index
    %c0_122 = arith.constant 0 : index
    %c0_123 = arith.constant 0 : index
    %163 = vector.load %arg1[%c7_121, %c0_122, %c0_123] : memref<9x1x512xf32, #tpu.memory_space<vmem>>, vector<1x1x512xf32>
    %164 = vector.shape_cast %163 : vector<1x1x512xf32> to vector<1x512xf32>
    %165 = vector.broadcast %164 : vector<1x512xf32> to vector<8x512xf32>
    %166 = arith.mulf %162, %165 : vector<8x512xf32>
    %c7_124 = arith.constant 7 : index
    %c0_125 = arith.constant 0 : index
    %c0_126 = arith.constant 0 : index
    %167 = vector.load %arg5[%c7_124, %c0_125, %c0_126] : memref<9x16x8xf32, #tpu.memory_space<vmem>>, vector<1x16x8xf32>
    %168 = vector.shape_cast %167 : vector<1x16x8xf32> to vector<16x8xf32>
    %cst_127 = arith.constant dense<0.000000e+00> : vector<16x512xf32>
    %169 = tpu.matmul %168, %166, %cst_127 {dimension_numbers = #tpu.dot_dimension_numbers<[1], [0], [0], [1], [0, 0, 1, 1], [], []>} : vector<16x8xf32>, vector<8x512xf32>, vector<16x512xf32> -> vector<16x512xf32>
    %170 = arith.addf %161, %169 : vector<16x512xf32>
    %c495_i32_128 = arith.constant 495 : i32
    %171 = tpu.dynamic_rotate %100 by %c495_i32_128 dim 1 : vector<8x512xf32>, i32 -> vector<8x512xf32>
    %c8_129 = arith.constant 8 : index
    %c0_130 = arith.constant 0 : index
    %c0_131 = arith.constant 0 : index
    %172 = vector.load %arg1[%c8_129, %c0_130, %c0_131] : memref<9x1x512xf32, #tpu.memory_space<vmem>>, vector<1x1x512xf32>
    %173 = vector.shape_cast %172 : vector<1x1x512xf32> to vector<1x512xf32>
    %174 = vector.broadcast %173 : vector<1x512xf32> to vector<8x512xf32>
    %175 = arith.mulf %171, %174 : vector<8x512xf32>
    %c8_132 = arith.constant 8 : index
    %c0_133 = arith.constant 0 : index
    %c0_134 = arith.constant 0 : index
    %176 = vector.load %arg5[%c8_132, %c0_133, %c0_134] : memref<9x16x8xf32, #tpu.memory_space<vmem>>, vector<1x16x8xf32>
    %177 = vector.shape_cast %176 : vector<1x16x8xf32> to vector<16x8xf32>
    %cst_135 = arith.constant dense<0.000000e+00> : vector<16x512xf32>
    %178 = tpu.matmul %177, %175, %cst_135 {dimension_numbers = #tpu.dot_dimension_numbers<[1], [0], [0], [1], [0, 0, 1, 1], [], []>} : vector<16x8xf32>, vector<8x512xf32>, vector<16x512xf32> -> vector<16x512xf32>
    %179 = arith.addf %170, %178 : vector<16x512xf32>
    %cst_136 = arith.constant dense<0.000000e+00> : vector<16xf32>
    %180 = vector.multi_reduction <add>, %179, %cst_136 [1] : vector<16x512xf32> to vector<16xf32>
    %181 = vector.shape_cast %180 : vector<16xf32> to vector<16x1xf32>
    %cst_137 = arith.constant 0.001953125 : f32
    %182 = vector.broadcast %cst_137 : f32 to vector<16x1xf32>
    %183 = arith.mulf %181, %182 : vector<16x1xf32>
    %184 = vector.broadcast %183 : vector<16x1xf32> to vector<16x512xf32>
    %185 = arith.subf %179, %184 : vector<16x512xf32>
    %186 = arith.mulf %185, %185 : vector<16x512xf32>
    %cst_138 = arith.constant dense<0.000000e+00> : vector<16xf32>
    %187 = vector.multi_reduction <add>, %186, %cst_138 [1] : vector<16x512xf32> to vector<16xf32>
    %188 = vector.shape_cast %187 : vector<16xf32> to vector<16x1xf32>
    %cst_139 = arith.constant 0.001953125 : f32
    %189 = vector.broadcast %cst_139 : f32 to vector<16x1xf32>
    %190 = arith.mulf %188, %189 : vector<16x1xf32>
    %cst_140 = arith.constant 9.99999974E-6 : f32
    %191 = vector.broadcast %cst_140 : f32 to vector<16x1xf32>
    %192 = arith.addf %190, %191 : vector<16x1xf32>
    %193 = math.rsqrt %192 : vector<16x1xf32>
    %194 = arith.mulf %101, %193 : vector<16x1xf32>
    %195 = vector.broadcast %194 : vector<16x1xf32> to vector<16x512xf32>
    %196 = arith.mulf %185, %195 : vector<16x512xf32>
    %197 = vector.broadcast %102 : vector<16x1xf32> to vector<16x512xf32>
    %198 = arith.addf %196, %197 : vector<16x512xf32>
    %cst_141 = arith.constant 0.000000e+00 : f32
    %199 = vector.broadcast %cst_141 : f32 to vector<16x512xf32>
    %200 = arith.maximumf %198, %199 : vector<16x512xf32>
    %c0_142 = arith.constant 0 : index
    %c0_143 = arith.constant 0 : index
    %201 = vector.load %arg8[%c0_142, %c0_143] : memref<16x512xf32, #tpu.memory_space<vmem>>, vector<16x512xf32>
    tpu.vector_store %arg8[%c0_142, %c0_143], %200 {strides = array<i32>} : memref<16x512xf32, #tpu.memory_space<vmem>>, vector<16x512xf32>,
    return
  }
}

</mosaic_0001>

<bundles_post_ra>
// kernel: tpu_custom_call.1
= control target key start
LH: loop header
LB: loop body
LE: loop exit
PB: predicated region body
PF: predicated region fallthrough
CT: control target
= control target key end

     0   :  { %s3612_s0 = inlined_call_operand.vmem [shape: f32[4,512], index: 0, kind: input, shape index: {}]   ;;  %s3613_s1 = inlined_call_operand.vmem [shape: f32[9,1,512], index: 1, kind: input, shape index: {}]   ;;  %s3614_s2 = inlined_call_operand.vmem [shape: f32[9,8,4], index: 2, kind: input, shape index: {}]   ;;  %s3615_s3 = inlined_call_operand.vmem [shape: f32[8,1], index: 3, kind: input, shape index: {}]   ;;  %s3616_s4 = inlined_call_operand.vmem [shape: f32[8,1], index: 4, kind: input, shape index: {}]   ;;  %s3617_s5 = inlined_call_operand.vmem [shape: f32[9,16,8], index: 5, kind: input, shape index: {}]   ;;  %s3618_s6 = inlined_call_operand.vmem [shape: f32[16,1], index: 6, kind: input, shape index: {}]   ;;  %s3619_s7 = inlined_call_operand.vmem [shape: f32[16,1], index: 7, kind: input, shape index: {}]   ;;  %s3620_s8 = inlined_call_operand.hbm [shape: f32[16,512], index: 8, kind: output, shape index: {}]  }
   0x1   :  { %v2821_v0 = vld [vmem:[%s3612_s0] sm:$0xff]  ;;  %v2826_v1 = vld [vmem:[%s3612_s0 + $0x8] sm:$0xff] }
   0x2   :  { %13 = vsyncpa [#allocation3], 0  ;;  %36 = vst [vmem:[#allocation1] ss:$2 sm:$0xff] %v2821_v0  ;;  %s2761_s9 = smov 17   ;;  %s2762_s0 = smov 16   ;;  %v55_v42 = vlaneseq }
   0x3   :  { %38 = vst [vmem:[#allocation1 + $0x10] ss:$2 sm:$0xff] %v2826_v1  ;;  %s2763_s10 = smov 15   ;;  %s2764_s11 = smov 1   ;;  %v2891_v45 = vld [vmem:[%s3613_s1 + $0x4] sm:$0xf] }
   0x4   :  { %s2765_s12 = smov 127   ;;  %s2766_s13 = smov 113   ;;  %v2893_v46 = vand.u32 127, %v55_v42  ;;  %v2898_v47 = vld [vmem:[%s3613_s1] sm:$0xf]  ;;  %v106_v49 = vperm.slane %v2891_v45, 2 }
   0x5   :  { %s2767_s14 = smov 112   ;;  %s2768_s15 = smov 111   ;;  %v107_v50 = vperm.slane %v2891_v45, 3  ;;  %v2906_v51 = vld [vmem:[%s3613_s1 + $0x8] sm:$0xf]  ;;  %v3644_v52 = vperm.slane %v2898_v47, 1 }
   0x6   :  { %vm96_vm0 = vcmp.lt.s32.totalorder %v2893_v46, 16  ;;  %vm329_vm1 = vcmp.lt.s32.totalorder %v2893_v46, 15  ;;  %vm57_vm2 = vcmp.lt.s32.totalorder %v2893_v46, 17  ;;  %v66_v53 = vperm.slane %v2898_v47, 2  ;;  %v2540_v63 = vld [vmem:[%s3614_s2 + $0x8] sm:$0xff]  ;;  %s2527_s30 = sshll.u32 %s3620_s8, 4  ;;  %s2528_s30 = int_to_ptr.hbm [resolvable:$true] %s2527_s30 }
   0x7   :  { %v104_v55 = vperm.slane %v2891_v45, 0  ;;  %v105_v56 = vperm.slane %v2891_v45, 1  ;;  %vm122_vm3 = vcmask 1043456   ;;  %v3643_v59 = vperm.slane %v2906_v51, 1  ;;  %s2772_s16 = smov 32  }
   0x8   :  { %vm118_vm4 = vcmask 31744   ;;  %vm469_vm5 = vcmp.lt.s32.totalorder %v2893_v46, 1  ;;  %vm713_vm6 = vcmp.lt.s32.totalorder %v2893_v46, 127  ;;  %vm853_vm7 = vcmp.lt.s32.totalorder %v2893_v46, 113 }
   0x9   :  { %v39_v2 = vld.sshfl [vmem:[#allocation1] sm:$0xff pattern:$0x75316420]  ;;  %v40_v3 = vld.sshfl [vmem:[#allocation1 + $0x8] sm:$0xff pattern:$0x75316420] }
   0xa   :  { %47 = vrot.lane.b32.xlu1 %v39_v2, %s2761_s9  ;;  %77 = vst [vmem:[#allocation1] ss:$2 sm:$0xff] %v2821_v0  ;;  %v41_v4 = vld.sshfl [vmem:[#allocation1 + $0x10] sm:$0xff pattern:$0x75316420]  ;;  %49 = vrot.lane.b32.xlu2 %v40_v3, %s2761_s9  ;;  %vm993_vm8 = vcmp.lt.s32.totalorder %v2893_v46, 112 }
   0xb   :  { %v42_v5 = vld.sshfl [vmem:[#allocation1 + $0x18] sm:$0xff pattern:$0x75316420]  ;;  %vm1133_vm9 = vcmp.lt.s32.totalorder %v2893_v46, 111  ;;  %vm1349_vm13 = vcmask 64512  }
   0xc   :  { %79 = vst [vmem:[#allocation1 + $0x10] ss:$2 sm:$0xff] %v2826_v1  ;;  %v2695_v46 = vld [vmem:[%s3617_s5 + $0x78] sm:$0xff] }
  0x11   :  { %v81_v6 = vld.sshfl [vmem:[#allocation1 + $0x8] sm:$0xff pattern:$0x75316420]  ;;  %v80_v7 = vld.sshfl [vmem:[#allocation1] sm:$0xff pattern:$0x75316420] }
  0x12   :  { %90 = vrot.lane.b32.xlu0 %v81_v6, %s2762_s0  ;;  %310 = vst [vmem:[#allocation1] ss:$2 sm:$0xff] %v2821_v0  ;;  %51 = vrot.lane.b32.xlu2 %v41_v4, %s2761_s9 }
  0x13   :  { %v83_v8 = vld.sshfl [vmem:[#allocation1 + $0x18] sm:$0xff pattern:$0x75316420]  ;;  %v82_v9 = vld.sshfl [vmem:[#allocation1 + $0x10] sm:$0xff pattern:$0x75316420] }
  0x14   :  { %94 = vrot.lane.b32.xlu1 %v83_v8, %s2762_s0  ;;  %312 = vst [vmem:[#allocation1 + $0x10] ss:$2 sm:$0xff] %v2826_v1 }
  0x19   :  { %v313_v10 = vld.sshfl [vmem:[#allocation1] sm:$0xff pattern:$0x75316420]  ;;  %v314_v11 = vld.sshfl [vmem:[#allocation1 + $0x8] sm:$0xff pattern:$0x75316420] }
  0x1a   :  { %92 = vrot.lane.b32.xlu0 %v82_v9, %s2762_s0  ;;  %450 = vst [vmem:[#allocation1] ss:$2 sm:$0xff] %v2821_v0  ;;  %323 = vrot.lane.b32.xlu2 %v314_v11, %s2763_s10  ;;  %v67_v11 = vperm.slane %v2898_v47, 3 }
  0x1b   :  { %v316_v12 = vld.sshfl [vmem:[#allocation1 + $0x18] sm:$0xff pattern:$0x75316420]  ;;  %v315_v13 = vld.sshfl [vmem:[#allocation1 + $0x10] sm:$0xff pattern:$0x75316420] }
  0x1c   :  { %88 = vrot.lane.b32.xlu1 %v80_v7, %s2762_s0  ;;  %452 = vst [vmem:[#allocation1 + $0x10] ss:$2 sm:$0xff] %v2826_v1 }
  0x21   :  { %v454_v14 = vld.sshfl [vmem:[#allocation1 + $0x8] sm:$0xff pattern:$0x75316420]  ;;  %v453_v15 = vld.sshfl [vmem:[#allocation1] sm:$0xff pattern:$0x75316420] }
  0x22   :  { %53 = vrot.lane.b32.xlu0 %v42_v5, %s2761_s9  ;;  %592 = vst [vmem:[#allocation1] ss:$2 sm:$0xff] %v2821_v0  ;;  %321 = vrot.lane.b32.xlu2 %v313_v10, %s2763_s10  ;;  %v64_v10 = vperm.slane %v2898_v47, 0 }
  0x23   :  { %v455_v16 = vld.sshfl [vmem:[#allocation1 + $0x10] sm:$0xff pattern:$0x75316420]  ;;  %v456_v17 = vld.sshfl [vmem:[#allocation1 + $0x18] sm:$0xff pattern:$0x75316420] }
  0x24   :  { %327 = vrot.lane.b32.xlu1 %v316_v12, %s2763_s10  ;;  %594 = vst [vmem:[#allocation1 + $0x10] ss:$2 sm:$0xff] %v2826_v1 }
  0x29   :  { %v2849_v18 = vld.sshfl [vmem:[#allocation1] sm:$0xff pattern:$0x75316420]  ;;  %v2851_v19 = vld.sshfl [vmem:[#allocation1 + $0x8] sm:$0xff pattern:$0x75316420] }
  0x2a   :  { %325 = vrot.lane.b32.xlu0 %v315_v13, %s2763_s10  ;;  %694 = vst [vmem:[#allocation1] ss:$2 sm:$0xff] %v2821_v0  ;;  %467 = vrot.lane.b32.xlu2 %v456_v17, %s2764_s11 }
  0x2b   :  { %v2856_v20 = vld.sshfl [vmem:[#allocation1 + $0x10] sm:$0xff pattern:$0x75316420]  ;;  %v2858_v21 = vld.sshfl [vmem:[#allocation1 + $0x18] sm:$0xff pattern:$0x75316420] }
  0x2c   :  { %465 = vrot.lane.b32.xlu1 %v455_v16, %s2764_s11  ;;  %696 = vst [vmem:[#allocation1 + $0x10] ss:$2 sm:$0xff] %v2826_v1 }
  0x31   :  { %v698_v22 = vld.sshfl [vmem:[#allocation1 + $0x8] sm:$0xff pattern:$0x75316420]  ;;  %v697_v23 = vld.sshfl [vmem:[#allocation1] sm:$0xff pattern:$0x75316420] }
  0x32   :  { %463 = vrot.lane.b32.xlu0 %v454_v14, %s2764_s11  ;;  %834 = vst [vmem:[#allocation1] ss:$2 sm:$0xff] %v2821_v0  ;;  %v3641_v14 = vperm.slane %v2906_v51, 0 }
  0x33   :  { %v699_v24 = vld.sshfl [vmem:[#allocation1 + $0x10] sm:$0xff pattern:$0x75316420]  ;;  %v700_v25 = vld.sshfl [vmem:[#allocation1 + $0x18] sm:$0xff pattern:$0x75316420] }
  0x34   :  { %709 = vrot.lane.b32.xlu1 %v699_v24, %s2765_s12  ;;  %836 = vst [vmem:[#allocation1 + $0x10] ss:$2 sm:$0xff] %v2826_v1  ;;  %711 = vrot.lane.b32.xlu2 %v700_v25, %s2765_s12  ;;  %v76_v24 = vld [vmem:[%s3614_s2] sm:$0xff] }
  0x39   :  { %v837_v26 = vld.sshfl [vmem:[#allocation1] sm:$0xff pattern:$0x75316420]  ;;  %v838_v27 = vld.sshfl [vmem:[#allocation1 + $0x8] sm:$0xff pattern:$0x75316420] }
  0x3a   :  { %461 = vrot.lane.b32.xlu0 %v453_v15, %s2764_s11  ;;  %974 = vst [vmem:[#allocation1] ss:$2 sm:$0xff] %v2821_v0 }
  0x3b   :  { %v839_v28 = vld.sshfl [vmem:[#allocation1 + $0x10] sm:$0xff pattern:$0x75316420]  ;;  %v840_v29 = vld.sshfl [vmem:[#allocation1 + $0x18] sm:$0xff pattern:$0x75316420] }
  0x3c   :  { %707 = vrot.lane.b32.xlu1 %v698_v22, %s2765_s12  ;;  %976 = vst [vmem:[#allocation1 + $0x10] ss:$2 sm:$0xff] %v2826_v1  ;;  %849 = vrot.lane.b32.xlu2 %v839_v28, %s2766_s13  ;;  %v339_v28 = vperm.slane %v2906_v51, 2 }
  0x41   :  { %v978_v30 = vld.sshfl [vmem:[#allocation1 + $0x8] sm:$0xff pattern:$0x75316420]  ;;  %v977_v31 = vld.sshfl [vmem:[#allocation1] sm:$0xff pattern:$0x75316420] }
  0x42   :  { %705 = vrot.lane.b32.xlu0 %v697_v23, %s2765_s12  ;;  %1114 = vst [vmem:[#allocation1] ss:$2 sm:$0xff] %v2821_v0 }
  0x43   :  { %v980_v32 = vld.sshfl [vmem:[#allocation1 + $0x18] sm:$0xff pattern:$0x75316420]  ;;  %v979_v33 = vld.sshfl [vmem:[#allocation1 + $0x10] sm:$0xff pattern:$0x75316420] }
  0x44   :  { %845 = vrot.lane.b32.xlu1 %v837_v26, %s2766_s13  ;;  %1116 = vst [vmem:[#allocation1 + $0x10] ss:$2 sm:$0xff] %v2826_v1  ;;  %847 = vrot.lane.b32.xlu2 %v838_v27, %s2766_s13  ;;  %v2985_v27 = vld [vmem:[%s3613_s1 + $0xc] sm:$0xf] }
  0x45   :  { %v3638_v42 = vperm.slane %v2985_v27, 2 }
  0x49   :  { %v1118_v36 = vld.sshfl [vmem:[#allocation1 + $0x8] sm:$0xff pattern:$0x75316420]  ;;  %v1117_v37 = vld.sshfl [vmem:[#allocation1] sm:$0xff pattern:$0x75316420] }
  0x4a   :  { %851 = vrot.lane.b32.xlu0 %v840_v29, %s2766_s13  ;;  %v3640_v29 = vperm.slane %v2906_v51, 3 }
  0x4b   :  { %v1119_v34 = vld.sshfl [vmem:[#allocation1 + $0x10] sm:$0xff pattern:$0x75316420]  ;;  %v1120_v35 = vld.sshfl [vmem:[#allocation1 + $0x18] sm:$0xff pattern:$0x75316420] }
  0x4c   :  { %991 = vrot.lane.b32.xlu1 %v980_v32, %s2767_s14  ;;  %985 = vrot.lane.b32.xlu2 %v977_v31, %s2767_s14  ;;  %v3637_v31 = vperm.slane %v2985_v27, 3 }
  0x52   :  { %989 = vrot.lane.b32.xlu0 %v979_v33, %s2767_s14 }
  0x54   :  { %1129 = vrot.lane.b32.xlu1 %v1119_v34, %s2768_s15  ;;  %1131 = vrot.lane.b32.xlu2 %v1120_v35, %s2768_s15 }
  0x5a   :  { %987 = vrot.lane.b32.xlu0 %v978_v30, %s2767_s14 }
  0x5c   :  { %1127 = vrot.lane.b32.xlu1 %v1118_v36, %s2768_s15 }
  0x62   :  { %1125 = vrot.lane.b32.xlu0 %v1117_v37, %s2768_s15 }
  0x64   :  { %v50_v38 = vpop.permute.xlu2 %49 }
  0x6c   :  { %v52_v39 = vpop.permute.xlu2 %51 }
  0x6d   :  { %v59_v2 = vsel %vm57_vm2, %v50_v38, %v52_v39 }
  0x6e   :  { %v74_v9 = vmul.f32 %v66_v53, %v59_v2 }
  0x74   :  { %v2886_v41 = vpop.permute.xlu2 %323 }
  0x7c   :  { %v48_v40 = vpop.permute.xlu1 %47  ;;  %v322_v48 = vpop.permute.xlu2 %321 }
  0x7d   :  { %v332_v0 = vsel %vm329_vm1, %v322_v48, %v2886_v41  ;;  %v60_v1 = vsel %vm57_vm2, %v48_v40, %v50_v38  ;;  %v2558_v38 = vld [vmem:[%s3614_s2 + $0x10] sm:$0xff] }
  0x7e   :  { %v346_v7 = vmul.f32 %v3643_v59, %v332_v0  ;;  %v73_v8 = vmul.f32 %v3644_v52, %v60_v1 }
  0x84   :  { %v91_v43 = vpop.permute.xlu0 %90  ;;  %v2955_v12 = vpop.permute.xlu2 %467 }
  0x86   :  { %v95_v44 = vpop.permute.xlu1 %94 }
  0x8c   :  { %v93_v54 = vpop.permute.xlu0 %92 }
  0x8d   :  { %v97_v57 = vsel %vm96_vm0, %v93_v54, %v95_v44  ;;  %v98_v58 = vsel %vm96_vm0, %v91_v43, %v93_v54 }
  0x8e   :  { %v89_v60 = vpop.permute.xlu1 %88  ;;  %v114_v61 = vmul.f32 %v106_v49, %v98_v58  ;;  %v115_v62 = vmul.f32 %v107_v50, %v97_v57  ;;  %v2994_v32 = vpop.permute.xlu2 %711  ;;  %v2568_v58 = vld [vmem:[%s3614_s2 + $0x18] sm:$0xff] }
  0x8f   :  { %v99_v3 = vsel %vm96_vm0, %v89_v60, %v91_v43  ;;  %v100_v4 = vsel %vm96_vm0, %v95_v44, %v89_v60 }
  0x90   :  { %v112_v5 = vmul.f32 %v104_v55, %v100_v4  ;;  %v113_v6 = vmul.f32 %v105_v56, %v99_v3  ;;  %2545 = vmatpush.msk.msra.mxu2 %vm122_vm3, %v114_v61  ;;  %2547 = vmatpush.msk.msra.mxu3 %vm122_vm3, %v115_v62  ;;  %v3639_v62 = vperm.slane %v2985_v27, 0 }
  0x91   :  { %2546 = vmatmul.msk.f32.vlgmr.msra.gmra.mxu2 %vm118_vm4, %v2540_v63  ;;  %2548 = vmatmul.msk.f32.vlgmr.msra.gmra.mxu3 %vm118_vm4, %v2540_v63 }
  0x92   :  { %2541 = vmatpush.msk.msra.mxu0 %vm122_vm3, %v112_v5  ;;  %2543 = vmatpush.msk.msra.mxu1 %vm122_vm3, %v113_v6 }
  0x93   :  { %2542 = vmatmul.msk.f32.vlgmr.msra.gmra.mxu0 %vm118_vm4, %v2540_v63  ;;  %2544 = vmatmul.msk.f32.vlgmr.msra.gmra.mxu1 %vm118_vm4, %v2540_v63  ;;  %v3642_v63 = vperm.slane %v2985_v27, 1 }
  0x94   :  { %2551 = vmatpush.msk.msrb.mxu1 %vm122_vm3, %v73_v8  ;;  %2553 = vmatpush.msk.msrb.mxu2 %vm122_vm3, %v74_v9  ;;  %v54_v13 = vpop.permute.xlu0 %53  ;;  %v3070_v8 = vld [vmem:[%s3613_s1 + $0x18] sm:$0xf] }
  0x95   :  { %v58_v15 = vsel %vm57_vm2, %v52_v39, %v54_v13  ;;  %v61_v16 = vsel %vm57_vm2, %v54_v13, %v48_v40 }
  0x96   :  { %2561 = vmatpush.msk.msra.mxu1 %vm122_vm3, %v346_v7  ;;  %v72_v17 = vmul.f32 %v64_v10, %v61_v16  ;;  %v75_v22 = vmul.f32 %v67_v11, %v58_v15  ;;  %v328_v23 = vpop.permute.xlu1 %327  ;;  %v3037_v60 = vpop.permute.xlu2 %849  ;;  %v2577_v7 = vld [vmem:[%s3614_s2 + $0x20] sm:$0xff]  ;;  %v3628_v16 = vperm.slane %v3070_v8, 1 }
  0x97   :  { %v333_v25 = vsel %vm329_vm1, %v328_v23, %v322_v48 }
  0x98   :  { %2549 = vmatpush.msk.msrb.mxu0 %vm122_vm3, %v72_v17  ;;  %2555 = vmatpush.msk.msrb.mxu3 %vm122_vm3, %v75_v22  ;;  %v345_v26 = vmul.f32 %v3641_v14, %v333_v25 }
  0x99   :  { %2554 = vmatmul.msk.f32.vlgmr.msrb.gmra.mxu2 %vm118_vm4, %v76_v24  ;;  %2556 = vmatmul.msk.f32.vlgmr.msrb.gmra.mxu3 %vm118_vm4, %v76_v24 }
  0x9a   :  { %2559 = vmatpush.msk.msra.mxu0 %vm122_vm3, %v345_v26 }
  0x9b   :  { %2550 = vmatmul.msk.f32.vlgmr.msrb.gmra.mxu0 %vm118_vm4, %v76_v24  ;;  %2552 = vmatmul.msk.f32.vlgmr.msrb.gmra.mxu1 %vm118_vm4, %v76_v24 }
  0x9c   :  { %v326_v30 = vpop.permute.xlu0 %325 }
  0x9d   :  { %v330_v33 = vsel %vm329_vm1, %v326_v30, %v328_v23  ;;  %v331_v34 = vsel %vm329_vm1, %v2886_v41, %v326_v30  ;;  %v3020_v41 = vld [vmem:[%s3613_s1 + $0x14] sm:$0xf] }
  0x9e   :  { %v347_v35 = vmul.f32 %v339_v28, %v331_v34  ;;  %v348_v36 = vmul.f32 %v3640_v29, %v330_v33  ;;  %v466_v37 = vpop.permute.xlu1 %465  ;;  %v3636_v44 = vperm.slane %v3020_v41, 2  ;;  %v3633_v1 = vperm.slane %v3020_v41, 1 }
  0x9f   :  { %v470_v39 = vsel %vm469_vm5, %v466_v37, %v2955_v12  ;;  %v3634_v13 = vperm.slane %v3020_v41, 0  ;;  %v3635_v15 = vperm.slane %v3020_v41, 3 }
  0xa0   :  { %2563 = vmatpush.msk.msra.mxu2 %vm122_vm3, %v347_v35  ;;  %2565 = vmatpush.msk.msra.mxu3 %vm122_vm3, %v348_v36  ;;  %v488_v40 = vmul.f32 %v3637_v31, %v470_v39  ;;  %v3118_v35 = vld [vmem:[%s3613_s1 + $0x1c] sm:$0xf]  ;;  %v3632_v36 = vperm.slane %v3070_v8, 2 }
  0xa1   :  { %2564 = vmatmul.msk.f32.vlgmr.msra.gmra.mxu2 %vm118_vm4, %v2558_v38  ;;  %2566 = vmatmul.msk.f32.vlgmr.msra.gmra.mxu3 %vm118_vm4, %v2558_v38 }
  0xa2   :  { %2575 = vmatpush.msk.msrb.mxu3 %vm122_vm3, %v488_v40  ;;  %v3627_v40 = vperm.slane %v3118_v35, 3 }
  0xa3   :  { %2560 = vmatmul.msk.f32.vlgmr.msra.gmra.mxu0 %vm118_vm4, %v2558_v38  ;;  %2562 = vmatmul.msk.f32.vlgmr.msra.gmra.mxu1 %vm118_vm4, %v2558_v38 }
  0xa4   :  { %v464_v43 = vpop.permute.xlu0 %463  ;;  %2584 = vmatpush.msk.msra.mxu3 %vm122_vm3, %v2858_v21 }
  0xa5   :  { %v471_v48 = vsel %vm469_vm5, %v464_v43, %v466_v37  ;;  %v3631_v37 = vperm.slane %v3070_v8, 3 }
  0xa6   :  { %v487_v54 = vmul.f32 %v3638_v42, %v471_v48  ;;  %v710_v57 = vpop.permute.xlu1 %709 }
  0xa7   :  { %v714_v61 = vsel %vm713_vm6, %v710_v57, %v2994_v32 }
  0xa8   :  { %2573 = vmatpush.msk.msrb.mxu2 %vm122_vm3, %v487_v54  ;;  %v731_v21 = vmul.f32 %v3636_v44, %v714_v61  ;;  %v2597_v61 = vld [vmem:[%s3614_s2 + $0x30] sm:$0xff] }
  0xa9   :  { %2574 = vmatmul.msk.f32.vlgmr.msrb.gmra.mxu2 %vm118_vm4, %v2568_v58  ;;  %2576 = vmatmul.msk.f32.vlgmr.msrb.gmra.mxu3 %vm118_vm4, %v2568_v58 }
  0xaa   :  { %2582 = vmatpush.msk.msra.mxu2 %vm122_vm3, %v2856_v20 }
  0xac   :  { %2592 = vmatpush.msk.msrb.mxu2 %vm122_vm3, %v731_v21  ;;  %v462_v0 = vpop.permute.xlu0 %461 }
  0xad   :  { %v472_v2 = vsel %vm469_vm5, %v462_v0, %v464_v43  ;;  %v473_v3 = vsel %vm469_vm5, %v2955_v12, %v462_v0  ;;  %v848_v12 = vpop.permute.xlu2 %847  ;;  %v3151_v0 = vld [vmem:[%s3613_s1 + $0x20] sm:$0xf]  ;;  %s2771_s1 = smov 512  }
  0xae   :  { %v485_v4 = vmul.f32 %v3639_v62, %v473_v3  ;;  %v486_v5 = vmul.f32 %v3642_v63, %v472_v2  ;;  %v708_v6 = vpop.permute.xlu1 %707  ;;  %v855_v17 = vsel %vm853_vm7, %v848_v12, %v3037_v60  ;;  %v3629_v2 = vperm.slane %v3118_v35, 2 }
  0xaf   :  { %v715_v20 = vsel %vm713_vm6, %v708_v6, %v710_v57  ;;  %v870_v33 = vmul.f32 %v3628_v16, %v855_v17 }
  0xb0   :  { %v730_v9 = vmul.f32 %v3633_v1, %v715_v20  ;;  %2569 = vmatpush.msk.msrb.mxu0 %vm122_vm3, %v485_v4  ;;  %2571 = vmatpush.msk.msrb.mxu1 %vm122_vm3, %v486_v5  ;;  %v3624_v4 = vperm.slane %v3151_v0, 2 }
  0xb1   :  { %2570 = vmatmul.msk.f32.vlgmr.msrb.gmra.mxu0 %vm118_vm4, %v2568_v58  ;;  %2572 = vmatmul.msk.f32.vlgmr.msrb.gmra.mxu1 %vm118_vm4, %v2568_v58 }
  0xb2   :  { %2580 = vmatpush.msk.msra.mxu1 %vm122_vm3, %v2851_v19  ;;  %2583 = vmatmul.msk.f32.vlgmr.msra.gmra.mxu2 %vm118_vm4, %v2577_v7  ;;  %v3630_v19 = vperm.slane %v3070_v8, 0 }
  0xb3   :  { %2585 = vmatmul.msk.f32.vlgmr.msra.gmra.mxu3 %vm118_vm4, %v2577_v7  ;;  %2578 = vmatpush.msk.msra.mxu0 %vm122_vm3, %v2849_v18  ;;  %v2587_v18 = vld [vmem:[%s3614_s2 + $0x28] sm:$0xff] }
  0xb4   :  { %2590 = vmatpush.msk.msrb.mxu1 %vm122_vm3, %v730_v9  ;;  %v706_v22 = vpop.permute.xlu0 %705  ;;  %v2607_v9 = vld [vmem:[%s3614_s2 + $0x38] sm:$0xff] }
  0xb5   :  { %v716_v23 = vsel %vm713_vm6, %v706_v22, %v708_v6  ;;  %v717_v24 = vsel %vm713_vm6, %v2994_v32, %v706_v22  ;;  %v986_v38 = vpop.permute.xlu2 %985  ;;  %v3626_v22 = vperm.slane %v3118_v35, 0 }
  0xb6   :  { %v729_v25 = vmul.f32 %v3634_v13, %v716_v23  ;;  %v732_v26 = vmul.f32 %v3635_v15, %v717_v24  ;;  %v846_v30 = vpop.permute.xlu1 %845  ;;  %v3625_v23 = vperm.slane %v3118_v35, 1 }
  0xb7   :  { %v856_v34 = vsel %vm853_vm7, %v846_v30, %v848_v12 }
  0xb8   :  { %2588 = vmatpush.msk.msrb.mxu0 %vm122_vm3, %v729_v25  ;;  %2594 = vmatpush.msk.msrb.mxu3 %vm122_vm3, %v732_v26  ;;  %v869_v32 = vmul.f32 %v3630_v19, %v856_v34  ;;  %v3621_v25 = vperm.slane %v3151_v0, 1 }
  0xb9   :  { %2579 = vmatmul.msk.f32.vlgmr.msra.gmra.mxu0 %vm118_vm4, %v2577_v7  ;;  %2581 = vmatmul.msk.f32.vlgmr.msra.gmra.mxu1 %vm118_vm4, %v2577_v7 }
  0xba   :  { %2593 = vmatmul.msk.f32.vlgmr.msrb.gmra.mxu2 %vm118_vm4, %v2587_v18  ;;  %2600 = vmatpush.msk.msra.mxu1 %vm122_vm3, %v870_v33 }
  0xbb   :  { %2595 = vmatmul.msk.f32.vlgmr.msrb.gmra.mxu3 %vm118_vm4, %v2587_v18  ;;  %2598 = vmatpush.msk.msra.mxu0 %vm122_vm3, %v869_v32 }
  0xbc   :  { %v852_v39 = vpop.permute.xlu0 %851 }
  0xbd   :  { %v854_v43 = vsel %vm853_vm7, %v3037_v60, %v852_v39  ;;  %v857_v48 = vsel %vm853_vm7, %v852_v39, %v846_v30  ;;  %v1132_v5 = vpop.permute.xlu2 %1131  ;;  %v2617_v39 = vld [vmem:[%s3614_s2 + $0x40] sm:$0xff] }
  0xbe   :  { %v871_v54 = vmul.f32 %v3632_v36, %v854_v43  ;;  %v872_v57 = vmul.f32 %v3631_v37, %v857_v48  ;;  %v992_v58 = vpop.permute.xlu1 %991  ;;  %v3623_v48 = vperm.slane %v3151_v0, 3 }
  0xbf   :  { %v997_v21 = vsel %vm993_vm8, %v992_v58, %v986_v38 }
  0xc0   :  { %2602 = vmatpush.msk.msra.mxu2 %vm122_vm3, %v871_v54  ;;  %2604 = vmatpush.msk.msra.mxu3 %vm122_vm3, %v872_v57  ;;  %v1012_v60 = vmul.f32 %v3627_v40, %v997_v21 }
  0xc1   :  { %2589 = vmatmul.msk.f32.vlgmr.msrb.gmra.mxu0 %vm118_vm4, %v2587_v18  ;;  %2591 = vmatmul.msk.f32.vlgmr.msrb.gmra.mxu1 %vm118_vm4, %v2587_v18 }
  0xc2   :  { %2603 = vmatmul.msk.f32.vlgmr.msra.gmra.mxu2 %vm118_vm4, %v2597_v61  ;;  %2614 = vmatpush.msk.msrb.mxu3 %vm122_vm3, %v1012_v60 }
  0xc3   :  { %2605 = vmatmul.msk.f32.vlgmr.msra.gmra.mxu3 %vm118_vm4, %v2597_v61 }
  0xc4   :  { %v990_v3 = vpop.permute.xlu0 %989 }
  0xc5   :  { %v994_v6 = vsel %vm993_vm8, %v990_v3, %v992_v58 }
  0xc6   :  { %v1011_v20 = vmul.f32 %v3629_v2, %v994_v6  ;;  %v1130_v7 = vpop.permute.xlu1 %1129 }
  0xc7   :  { %v1134_v12 = vsel %vm1133_vm9, %v1130_v7, %v1132_v5 }
  0xc8   :  { %2612 = vmatpush.msk.msrb.mxu2 %vm122_vm3, %v1011_v20  ;;  %v1151_v17 = vmul.f32 %v3624_v4, %v1134_v12 }
  0xc9   :  { %2599 = vmatmul.msk.f32.vlgmr.msra.gmra.mxu0 %vm118_vm4, %v2597_v61  ;;  %2601 = vmatmul.msk.f32.vlgmr.msra.gmra.mxu1 %vm118_vm4, %v2597_v61 }
  0xca   :  { %2613 = vmatmul.msk.f32.vlgmr.msrb.gmra.mxu2 %vm118_vm4, %v2607_v9 }
  0xcb   :  { %2615 = vmatmul.msk.f32.vlgmr.msrb.gmra.mxu3 %vm118_vm4, %v2607_v9  ;;  %2622 = vmatpush.msk.msra.mxu2 %vm122_vm3, %v1151_v17 }
  0xcc   :  { %v988_v24 = vpop.permute.xlu0 %987 }
  0xcd   :  { %v995_v26 = vsel %vm993_vm8, %v988_v24, %v990_v3  ;;  %v996_v30 = vsel %vm993_vm8, %v986_v38, %v988_v24  ;;  %v3622_v38 = vperm.slane %v3151_v0, 0 }
  0xce   :  { %v1009_v33 = vmul.f32 %v3626_v22, %v996_v30  ;;  %v1010_v18 = vmul.f32 %v3625_v23, %v995_v26  ;;  %v1128_v34 = vpop.permute.xlu1 %1127 }
  0xcf   :  { %v1135_v32 = vsel %vm1133_vm9, %v1128_v34, %v1130_v7 }
  0xd0   :  { %v1150_v43 = vmul.f32 %v3621_v25, %v1135_v32  ;;  %2608 = vmatpush.msk.msrb.mxu0 %vm122_vm3, %v1009_v33  ;;  %2610 = vmatpush.msk.msrb.mxu1 %vm122_vm3, %v1010_v18 }
  0xd1   :  { %2609 = vmatmul.msk.f32.vlgmr.msrb.gmra.mxu0 %vm118_vm4, %v2607_v9  ;;  %2611 = vmatmul.msk.f32.vlgmr.msrb.gmra.mxu1 %vm118_vm4, %v2607_v9 }
  0xd2   :  { %2623 = vmatmul.msk.f32.vlgmr.msra.gmra.mxu2 %vm118_vm4, %v2617_v39  ;;  %2620 = vmatpush.msk.msra.mxu1 %vm122_vm3, %v1150_v43 }
  0xd4   :  { %v1126_v54 = vpop.permute.xlu0 %1125 }
  0xd5   :  { %v1136_v57 = vsel %vm1133_vm9, %v1126_v54, %v1128_v34  ;;  %v1137_v58 = vsel %vm1133_vm9, %v1132_v5, %v1126_v54 }
  0xd6   :  { %v1149_v61 = vmul.f32 %v3622_v38, %v1136_v57  ;;  %v1152_v21 = vmul.f32 %v3623_v48, %v1137_v58 }
  0xd8   :  { %2618 = vmatpush.msk.msra.mxu0 %vm122_vm3, %v1149_v61  ;;  %2624 = vmatpush.msk.msra.mxu3 %vm122_vm3, %v1152_v21 }
  0xd9   :  { %2619 = vmatmul.msk.f32.vlgmr.msra.gmra.mxu0 %vm118_vm4, %v2617_v39  ;;  %2621 = vmatmul.msk.f32.vlgmr.msra.gmra.mxu1 %vm118_vm4, %v2617_v39 }
  0xda   :  { %2625 = vmatmul.msk.f32.vlgmr.msra.gmra.mxu3 %vm118_vm4, %v2617_v39 }
 0x110   :  { %v152_v60 = vpop.f32.mrf.mxu0  ;;  %v172_v3 = vpop.f32.mrf.mxu1 }
 0x114   :  { %v192_v6 = vpop.f32.mrf.mxu2  ;;  %v212_v5 = vpop.f32.mrf.mxu3 }
 0x118   :  { %v247_v20 = vpop.f32.mrf.mxu0  ;;  %v267_v7 = vpop.f32.mrf.mxu1 }
 0x119   :  { %v248_v23 = vadd.f32 %v247_v20, %v152_v60  ;;  %v268_v22 = vadd.f32 %v267_v7, %v172_v3 }
 0x11c   :  { %v287_v9 = vpop.f32.mrf.mxu2  ;;  %v307_v12 = vpop.f32.mrf.mxu3 }
 0x11d   :  { %v288_v37 = vadd.f32 %v287_v9, %v192_v6  ;;  %v308_v31 = vadd.f32 %v307_v12, %v212_v5 }
 0x120   :  { %v383_v26 = vpop.f32.mrf.mxu0  ;;  %v403_v30 = vpop.f32.mrf.mxu1 }
 0x121   :  { %v446_v40 = vadd.f32 %v383_v26, %v248_v23  ;;  %v447_v2 = vadd.f32 %v403_v30, %v268_v22 }
 0x124   :  { %v423_v17 = vpop.f32.mrf.mxu2  ;;  %v443_v24 = vpop.f32.mrf.mxu3 }
 0x125   :  { %v448_v42 = vadd.f32 %v423_v17, %v288_v37  ;;  %v449_v14 = vadd.f32 %v443_v24, %v308_v31 }
 0x12c   :  { %v563_v33 = vpop.f32.mrf.mxu2  ;;  %v583_v18 = vpop.f32.mrf.mxu3 }
 0x12d   :  { %v588_v63 = vadd.f32 %v563_v33, %v448_v42  ;;  %v589_v60 = vadd.f32 %v583_v18, %v449_v14  ;;  %v2769_v18 = vmov 0  }
 0x12e   :  { %v523_v34 = vpop.f32.mrf.mxu0  ;;  %v543_v32 = vpop.f32.mrf.mxu1  ;;  %2726 = vset.pattern.permute.xlu1 %v2769_v18  ;;  %2727 = vset.pattern.permute.xlu0 %v2769_v18 }
 0x12f   :  { %v586_v19 = vadd.f32 %v523_v34, %v446_v40  ;;  %v587_v36 = vadd.f32 %v543_v32, %v447_v2  ;;  %2728 = vset.pattern.permute.xlu2 %v2769_v18 }
 0x135   :  { %v667_v43 = vpop.f32.mrf.mxu2 }
 0x136   :  { %v627_v54 = vpop.f32.mrf.mxu0  ;;  %v687_v57 = vpop.f32.mrf.mxu3  ;;  %v692_v3 = vadd.f32 %v667_v43, %v588_v63 }
 0x137   :  { %v647_v39 = vpop.f32.mrf.mxu1  ;;  %v690_v13 = vadd.f32 %v627_v54, %v586_v19  ;;  %v693_v40 = vadd.f32 %v687_v57, %v589_v60 }
 0x138   :  { %v691_v62 = vadd.f32 %v647_v39, %v587_v36 }
 0x13d   :  { %v807_v58 = vpop.f32.mrf.mxu2 }
 0x13e   :  { %v767_v61 = vpop.f32.mrf.mxu0  ;;  %v827_v25 = vpop.f32.mrf.mxu3  ;;  %v832_v6 = vadd.f32 %v807_v58, %v692_v3 }
 0x13f   :  { %v787_v21 = vpop.f32.mrf.mxu1  ;;  %v830_v29 = vadd.f32 %v767_v61, %v690_v13  ;;  %v833_v26 = vadd.f32 %v827_v25, %v693_v40 }
 0x140   :  { %v831_v59 = vadd.f32 %v787_v21, %v691_v62  ;;  %v32_v21 = vld [vmem:[%s3615_s3] sm:$0xff] }
 0x145   :  { %v947_v38 = vpop.f32.mrf.mxu2 }
 0x146   :  { %v907_v48 = vpop.f32.mrf.mxu0  ;;  %v967_v16 = vpop.f32.mrf.mxu3  ;;  %v972_v5 = vadd.f32 %v947_v38, %v832_v6 }
 0x147   :  { %v927_v4 = vpop.f32.mrf.mxu1  ;;  %v970_v52 = vadd.f32 %v907_v48, %v830_v29  ;;  %v973_v13 = vadd.f32 %v967_v16, %v833_v26 }
 0x148   :  { %v971_v23 = vadd.f32 %v927_v4, %v831_v59 }
 0x14d   :  { %v1087_v15 = vpop.f32.mrf.mxu2 }
 0x14e   :  { %v1047_v1 = vpop.f32.mrf.mxu0  ;;  %v1107_v20 = vpop.f32.mrf.mxu3  ;;  %v1112_v31 = vadd.f32 %v1087_v15, %v972_v5 }
 0x14f   :  { %v1067_v44 = vpop.f32.mrf.mxu1  ;;  %v1110_v22 = vadd.f32 %v1047_v1, %v970_v52  ;;  %v1113_v62 = vadd.f32 %v1107_v20, %v973_v13  ;;  %v33_v20 = vld [vmem:[%s3616_s4] sm:$0xff] }
 0x150   :  { %v1111_v2 = vadd.f32 %v1067_v44, %v971_v23 }
 0x155   :  { %v1227_v36 = vpop.f32.mrf.mxu2 }
 0x156   :  { %v1187_v7 = vpop.f32.mrf.mxu0  ;;  %v1252_v29 = vadd.f32 %v1227_v36, %v1112_v31 }
 0x157   :  { %v1250_v19 = vadd.f32 %v1187_v7, %v1110_v22  ;;  %v1207_v9 = vpop.f32.mrf.mxu1 }
 0x158   :  { %v1251_v37 = vadd.f32 %v1207_v9, %v1111_v2 }
 0x15a   :  { %v1254_v42 = vadd.f32 %v1251_v37, %v1250_v19 }
 0x15c   :  { %v1255_v59 = vadd.f32 %v1254_v42, %v1252_v29 }
 0x15d   :  { %v1247_v14 = vpop.f32.mrf.mxu3 }
 0x15e   :  { %v1253_v63 = vadd.f32 %v1247_v14, %v1113_v62 }
 0x160   :  { %v1256_v4 = vadd.f32 %v1255_v59, %v1253_v63  ;;  %v2626_v59 = vld [vmem:[%s3617_s5 + $0x10] sm:$0xff] }
 0x162   :  { %1257 = vadd.xlane.f32.xlu2 %v1256_v4 }
 0x1d5   :  { %v1258_v52 = vpop.xlane.xlu2 %1257 }
 0x1d6   :  { %v1259_v1 = vmul.f32 0.001953125, %v1258_v52 }
 0x1d8   :  { %v1260_v44 = vsub.f32 %v1250_v19, %v1259_v1  ;;  %v1261_v48 = vsub.f32 %v1251_v37, %v1259_v1  ;;  %v1262_v12 = vsub.f32 %v1252_v29, %v1259_v1  ;;  %v1263_v17 = vsub.f32 %v1253_v63, %v1259_v1 }
 0x1da   :  { %v1264_v25 = vmul.f32 %v1260_v44, %v1260_v44  ;;  %v1265_v38 = vmul.f32 %v1261_v48, %v1261_v48  ;;  %v1266_v24 = vmul.f32 %v1262_v12, %v1262_v12  ;;  %v1267_v16 = vmul.f32 %v1263_v17, %v1263_v17 }
 0x1dc   :  { %v1268_v30 = vadd.f32 %v1265_v38, %v1264_v25 }
 0x1de   :  { %v1269_v15 = vadd.f32 %v1268_v30, %v1266_v24 }
 0x1e0   :  { %v1270_v33 = vadd.f32 %v1269_v15, %v1267_v16 }
 0x1e2   :  { %1271 = vadd.xlane.f32.xlu0 %v1270_v33 }
 0x255   :  { %v1272_v34 = vpop.xlane.xlu0 %1271 }
 0x256   :  { %v1273_v32 = vmul.f32 0.001953125, %v1272_v34 }
 0x258   :  { %v1274_v43 = vadd.f32 1e-05, %v1273_v32 }
 0x25a   :  { %2729 = vrsqrt.f32 %v1274_v43  ;;  %vm1281_vm11 = vweird.f32 %v1274_v43 }
 0x260   :  { %v2730_v54 = vpop.eup %2729 }
 0x261   :  { %v1276_v57 = vmul.f32 %v2730_v54, %v1274_v43  ;;  %vm1282_vm10 = vweird.f32 %v2730_v54 }
 0x262   :  { %vm1283_vm12 = vmor %vm1281_vm11, %vm1282_vm10 }
 0x263   :  { %v1277_v39 = vmul.f32 %v2730_v54, %v1276_v57 }
 0x265   :  { %v1278_v58 = vmul.f32 0.5, %v1277_v39 }
 0x267   :  { %v1279_v61 = vsub.f32 1.5, %v1278_v58 }
 0x269   :  { %v1280_v60 = vmul.f32 %v2730_v54, %v1279_v61 }
 0x26b   :  { %v1284_v3 = vsel %vm1283_vm12, %v2730_v54, %v1280_v60 }
 0x26c   :  { %v1285_v23 = vmul.f32 %v1284_v3, %v32_v21  ;;  %v3645_v21 = vperm.slane %v2898_v47, 1  ;;  %v3646_v3 = vperm.slane %v2906_v51, 1 }
 0x26e   :  { %1288 = vperm.xlu1 %2726, %v1285_v23  }
 0x276   :  { %1297 = vperm.xlu1 %2726, %v33_v20   ;;  %v2644_v20 = vld [vmem:[%s3617_s5 + $0x20] sm:$0xff] }
 0x2e0   :  { %v1289_v22 = vpop.permute.xlu1 %1288 }
 0x2e1   :  { %v1291_v40 = vmul.f32 %v1289_v22, %v1260_v44  ;;  %v1292_v6 = vmul.f32 %v1289_v22, %v1261_v48  ;;  %v1293_v2 = vmul.f32 %v1289_v22, %v1262_v12  ;;  %v1294_v13 = vmul.f32 %v1289_v22, %v1263_v17 }
 0x2e2   :  { %v3647_v22 = vperm.slane %v2985_v27, 1 }
 0x2e8   :  { %v1298_v7 = vpop.permute.xlu1 %1297 }
 0x2e9   :  { %v1300_v19 = vadd.f32 %v1298_v7, %v1291_v40  ;;  %v1301_v9 = vadd.f32 %v1298_v7, %v1292_v6  ;;  %v1302_v26 = vadd.f32 %v1298_v7, %v1293_v2  ;;  %v1303_v31 = vadd.f32 %v1298_v7, %v1294_v13 }
 0x2eb   :  { %v3221_v5 = vmax.f32 %v1300_v19, 0.0  ;;  %v3223_v37 = vmax.f32 %v1301_v9, 0.0  ;;  %v3225_v36 = vmax.f32 %v1302_v26, 0.0  ;;  %v3239_v42 = vmax.f32 %v1303_v31, 0.0 }
 0x2ec   :  { %v3648_v19 = vperm.slane %v2906_v51, 0  ;;  %v3649_v26 = vperm.slane %v2906_v51, 3  ;;  %v3650_v31 = vperm.slane %v2985_v27, 0 }
 0x2ed   :  { %1316 = vrot.lane.b32.xlu0 %v3225_v36, %s2761_s9  ;;  %1332 = vrot.lane.b32.xlu1 %v3223_v37, %s2762_s0 }
 0x2ee   :  { %1330 = vrot.lane.b32.xlu2 %v3221_v5, %s2762_s0 }
 0x2f5   :  { %1550 = vrot.lane.b32.xlu0 %v3225_v36, %s2763_s10  ;;  %1334 = vrot.lane.b32.xlu1 %v3225_v36, %s2762_s0 }
 0x2f6   :  { %1548 = vrot.lane.b32.xlu2 %v3223_v37, %s2763_s10 }
 0x2fd   :  { %1673 = vrot.lane.b32.xlu0 %v3223_v37, %s2764_s11  ;;  %1336 = vrot.lane.b32.xlu1 %v3239_v42, %s2762_s0 }
 0x2fe   :  { %1546 = vrot.lane.b32.xlu2 %v3221_v5, %s2763_s10 }
 0x305   :  { %1314 = vrot.lane.b32.xlu1 %v3223_v37, %s2761_s9  ;;  %1671 = vrot.lane.b32.xlu0 %v3221_v5, %s2764_s11 }
 0x306   :  { %1677 = vrot.lane.b32.xlu2 %v3239_v42, %s2764_s11 }
 0x30d   :  { %1318 = vrot.lane.b32.xlu1 %v3239_v42, %s2761_s9  ;;  %1905 = vrot.lane.b32.xlu0 %v3221_v5, %s2765_s12 }
 0x30e   :  { %1911 = vrot.lane.b32.xlu2 %v3239_v42, %s2765_s12 }
 0x315   :  { %2036 = vrot.lane.b32.xlu0 %v3239_v42, %s2766_s13  ;;  %1312 = vrot.lane.b32.xlu1 %v3221_v5, %s2761_s9 }
 0x316   :  { %2034 = vrot.lane.b32.xlu2 %v3225_v36, %s2766_s13 }
 0x31d   :  { %2159 = vrot.lane.b32.xlu0 %v3225_v36, %s2767_s14  ;;  %1552 = vrot.lane.b32.xlu1 %v3239_v42, %s2763_s10 }
 0x31e   :  { %2032 = vrot.lane.b32.xlu2 %v3223_v37, %s2766_s13 }
 0x325   :  { %2157 = vrot.lane.b32.xlu0 %v3223_v37, %s2767_s14  ;;  %1675 = vrot.lane.b32.xlu1 %v3225_v36, %s2764_s11 }
 0x326   :  { %2155 = vrot.lane.b32.xlu2 %v3221_v5, %s2767_s14 }
 0x32d   :  { %2280 = vrot.lane.b32.xlu0 %v3221_v5, %s2768_s15  ;;  %1909 = vrot.lane.b32.xlu1 %v3225_v36, %s2765_s12 }
 0x32e   :  { %2286 = vrot.lane.b32.xlu2 %v3239_v42, %s2768_s15 }
 0x335   :  { %1907 = vrot.lane.b32.xlu1 %v3223_v37, %s2765_s12 }
 0x33d   :  { %2030 = vrot.lane.b32.xlu1 %v3221_v5, %s2766_s13 }
 0x345   :  { %2161 = vrot.lane.b32.xlu1 %v3239_v42, %s2767_s14 }
 0x348   :  { %v1331_v62 = vpop.permute.xlu2 %1330 }
 0x34d   :  { %2284 = vrot.lane.b32.xlu1 %v3225_v36, %s2768_s15 }
 0x350   :  { %v1549_v24 = vpop.permute.xlu2 %1548 }
 0x355   :  { %2282 = vrot.lane.b32.xlu1 %v3223_v37, %s2768_s15 }
 0x358   :  { %v1547_v32 = vpop.permute.xlu2 %1546 }
 0x359   :  { %v1556_v57 = vsel %vm329_vm1, %v1547_v32, %v1549_v24 }
 0x35a   :  { %v1559_v23 = vmul.f32 %v1556_v57, %v3646_v3 }
 0x35f   :  { %v1333_v29 = vpop.permute.xlu1 %1332  ;;  %v1317_v52 = vpop.permute.xlu0 %1316 }
 0x360   :  { %v1340_v14 = vsel %vm96_vm0, %v1331_v62, %v1333_v29  ;;  %v1678_v47 = vpop.permute.xlu2 %1677 }
 0x361   :  { %v1343_v63 = vmul.f32 %v1340_v14, %v105_v56  ;;  %v2627_v56 = vld [vmem:[%s3617_s5 + $0x18] sm:$0xff] }
 0x363   :  { %1394 = vmatpush.msrb.mxu1 %v1343_v63 }
 0x364   :  { %2630 = vmatmul.msk.f32.vlgmr.msrb.gmra.mxu1 %vm1349_vm13, %v2626_v59 }
 0x367   :  { %v1335_v4 = vpop.permute.xlu1 %1334  ;;  %v1551_v38 = vpop.permute.xlu0 %1550 }
 0x368   :  { %v1339_v1 = vsel %vm96_vm0, %v1333_v29, %v1335_v4  ;;  %v1555_v16 = vsel %vm329_vm1, %v1549_v24, %v1551_v38  ;;  %v2645_v29 = vld [vmem:[%s3617_s5 + $0x28] sm:$0xff] }
 0x369   :  { %v1344_v44 = vmul.f32 %v1339_v1, %v106_v49  ;;  %v1560_v15 = vmul.f32 %v1555_v16, %v339_v28  ;;  %v1329_v28 = vld [vmem:[%s3617_s5 + $0x8] sm:$0xff] }
 0x36b   :  { %1417 = vmatpush.msrb.mxu2 %v1344_v44  ;;  %v2654_v44 = vld [vmem:[%s3617_s5 + $0x30] sm:$0xff] }
 0x36c   :  { %2632 = vmatmul.msk.f32.vlgmr.msrb.gmra.mxu2 %vm1349_vm13, %v2626_v59  ;;  %2631 = vmatmul.msk.f32.gmra.mxu1 %vm1349_vm13, %v2627_v56 }
 0x36f   :  { %v1337_v48 = vpop.permute.xlu1 %1336  ;;  %v1674_v33 = vpop.permute.xlu0 %1673 }
 0x370   :  { %v1338_v12 = vsel %vm96_vm0, %v1335_v4, %v1337_v48  ;;  %v1341_v17 = vsel %vm96_vm0, %v1337_v48, %v1331_v62 }
 0x371   :  { %v1342_v25 = vmul.f32 %v1341_v17, %v104_v55  ;;  %v1345_v49 = vmul.f32 %v1338_v12, %v107_v50  ;;  %v1328_v50 = vld [vmem:[%s3617_s5] sm:$0xff] }
 0x373   :  { %1371 = vmatpush.msrb.mxu0 %v1342_v25  ;;  %1440 = vmatpush.msrb.mxu3 %v1345_v49  ;;  %v3653_v25 = vperm.slane %v3020_v41, 2 }
 0x374   :  { %2633 = vmatmul.msk.f32.gmra.mxu2 %vm1349_vm13, %v2627_v56  ;;  %2634 = vmatmul.msk.f32.vlgmr.msrb.gmra.mxu3 %vm1349_vm13, %v2626_v59 }
 0x375   :  { %2628 = vmatmul.msk.f32.vlgmr.msrb.gmra.mxu0 %vm1349_vm13, %v2626_v59  ;;  %v3651_v59 = vperm.slane %v2985_v27, 2 }
 0x377   :  { %v1315_v30 = vpop.permute.xlu1 %1314  ;;  %v1672_v43 = vpop.permute.xlu0 %1671 }
 0x378   :  { %v1321_v55 = vsel %vm57_vm2, %v1315_v30, %v1317_v52  ;;  %v1681_v58 = vsel %vm469_vm5, %v1672_v43, %v1674_v33  ;;  %v1682_v6 = vsel %vm469_vm5, %v1678_v47, %v1672_v43 }
 0x379   :  { %v1326_v45 = vmul.f32 %v1321_v55, %v66_v53  ;;  %v1684_v40 = vmul.f32 %v1681_v58, %v3647_v22  ;;  %v1683_v62 = vmul.f32 %v1682_v6, %v3650_v31  ;;  %v3655_v55 = vperm.slane %v3020_v41, 0  ;;  %v2674_v22 = vld [vmem:[%s3617_s5 + $0x50] sm:$0xff] }
 0x37b   :  { %1515 = vmatpush.msra.mxu2 %v1326_v45 }
 0x37c   :  { %2635 = vmatmul.msk.f32.gmra.mxu3 %vm1349_vm13, %v2627_v56  ;;  %2640 = vmatmul.msk.f32.vlgmr.msra.gmra.mxu2 %vm1349_vm13, %v1328_v50 }
 0x37d   :  { %1632 = vmatpush.msrb.mxu2 %v1560_v15  ;;  %2629 = vmatmul.msk.f32.gmra.mxu0 %vm1349_vm13, %v2627_v56  ;;  %v3656_v15 = vperm.slane %v3020_v41, 1 }
 0x37f   :  { %v1319_v18 = vpop.permute.xlu1 %1318  ;;  %v1906_v56 = vpop.permute.xlu0 %1905 }
 0x380   :  { %v1320_v53 = vsel %vm57_vm2, %v1317_v52, %v1319_v18  ;;  %v3652_v52 = vperm.slane %v2985_v27, 3  ;;  %v1912_v27 = vpop.permute.xlu2 %1911 }
 0x381   :  { %v1327_v34 = vmul.f32 %v1320_v53, %v67_v11  ;;  %v1916_v17 = vsel %vm713_vm6, %v1912_v27, %v1906_v56  ;;  %v3657_v53 = vperm.slane %v3070_v8, 2 }
 0x383   :  { %1538 = vmatpush.msra.mxu3 %v1327_v34 }
 0x384   :  { %2641 = vmatmul.msk.f32.gmra.mxu2 %vm1349_vm13, %v1329_v28  ;;  %2642 = vmatmul.msk.f32.vlgmr.msra.gmra.mxu3 %vm1349_vm13, %v1328_v50 }
 0x387   :  { %v1313_v54 = vpop.permute.xlu1 %1312 }
 0x388   :  { %v1322_v39 = vsel %vm57_vm2, %v1313_v54, %v1315_v30  ;;  %v1323_v11 = vsel %vm57_vm2, %v1319_v18, %v1313_v54  ;;  %v2035_v16 = vpop.permute.xlu2 %2034  ;;  %v2664_v18 = vld [vmem:[%s3617_s5 + $0x40] sm:$0xff]  ;;  %v2665_v54 = vld [vmem:[%s3617_s5 + $0x48] sm:$0xff] }
 0x389   :  { %v1324_v61 = vmul.f32 %v1323_v11, %v64_v10  ;;  %v1325_v60 = vmul.f32 %v1322_v39, %v3645_v21 }
 0x38b   :  { %1469 = vmatpush.msra.mxu0 %v1324_v61  ;;  %1492 = vmatpush.msra.mxu1 %v1325_v60  ;;  %v3659_v60 = vperm.slane %v3070_v8, 0 }
 0x38c   :  { %2636 = vmatmul.msk.f32.vlgmr.msra.gmra.mxu0 %vm1349_vm13, %v1328_v50  ;;  %2638 = vmatmul.msk.f32.vlgmr.msra.gmra.mxu1 %vm1349_vm13, %v1328_v50 }
 0x38d   :  { %2643 = vmatmul.msk.f32.gmra.mxu3 %vm1349_vm13, %v1329_v28  ;;  %1609 = vmatpush.msrb.mxu1 %v1559_v23  ;;  %v3660_v23 = vperm.slane %v3118_v35, 2 }
 0x38e   :  { %2650 = vmatmul.msk.f32.vlgmr.msrb.gmra.mxu2 %vm1349_vm13, %v2644_v20 }
 0x38f   :  { %1734 = vmatpush.msra.mxu1 %v1684_v40  ;;  %v1553_v10 = vpop.permute.xlu1 %1552  ;;  %v3661_v40 = vperm.slane %v3070_v8, 1 }
 0x390   :  { %v1554_v2 = vsel %vm329_vm1, %v1551_v38, %v1553_v10  ;;  %v1557_v7 = vsel %vm329_vm1, %v1553_v10, %v1547_v32  ;;  %v3658_v32 = vperm.slane %v3070_v8, 3  ;;  %v2033_v57 = vpop.permute.xlu2 %2032  ;;  %v2675_v8 = vld [vmem:[%s3617_s5 + $0x58] sm:$0xff] }
 0x391   :  { %v1558_v9 = vmul.f32 %v1557_v7, %v3648_v19  ;;  %v1561_v13 = vmul.f32 %v1554_v2, %v3649_v26  ;;  %v2039_v21 = vsel %vm853_vm7, %v2033_v57, %v2035_v16  ;;  %v3662_v7 = vperm.slane %v3118_v35, 3 }
 0x393   :  { %1586 = vmatpush.msrb.mxu0 %v1558_v9  ;;  %1655 = vmatpush.msrb.mxu3 %v1561_v13 }
 0x394   :  { %2637 = vmatmul.msk.f32.gmra.mxu0 %vm1349_vm13, %v1329_v28  ;;  %2639 = vmatmul.msk.f32.gmra.mxu1 %vm1349_vm13, %v1329_v28 }
 0x395   :  { %2652 = vmatmul.msk.f32.vlgmr.msrb.gmra.mxu3 %vm1349_vm13, %v2644_v20  ;;  %1711 = vmatpush.msra.mxu0 %v1683_v62 }
 0x396   :  { %2651 = vmatmul.msk.f32.gmra.mxu2 %vm1349_vm13, %v2645_v29 }
 0x397   :  { %v1676_v51 = vpop.permute.xlu1 %1675 }
 0x398   :  { %v1679_v14 = vsel %vm469_vm5, %v1676_v51, %v1678_v47  ;;  %v1680_v63 = vsel %vm469_vm5, %v1674_v33, %v1676_v51  ;;  %v2043_v47 = vmul.f32 %v2039_v21, %v3661_v40  ;;  %v2156_v10 = vpop.permute.xlu2 %2155 }
 0x399   :  { %v1685_v4 = vmul.f32 %v1680_v63, %v3651_v59  ;;  %v1686_v1 = vmul.f32 %v1679_v14, %v3652_v52  ;;  %v2684_v14 = vld [vmem:[%s3617_s5 + $0x60] sm:$0xff]  ;;  %v3664_v63 = vperm.slane %v3118_v35, 1 }
 0x39b   :  { %1757 = vmatpush.msra.mxu2 %v1685_v4  ;;  %1780 = vmatpush.msra.mxu3 %v1686_v1  ;;  %v3665_v4 = vperm.slane %v3151_v0, 2 }
 0x39c   :  { %2646 = vmatmul.msk.f32.vlgmr.msrb.gmra.mxu0 %vm1349_vm13, %v2644_v20  ;;  %2648 = vmatmul.msk.f32.vlgmr.msrb.gmra.mxu1 %vm1349_vm13, %v2644_v20 }
 0x39d   :  { %2653 = vmatmul.msk.f32.gmra.mxu3 %vm1349_vm13, %v2645_v29  ;;  %1820 = vmatpush.msrb.mxu0 %v3221_v5  ;;  %v2655_v5 = vld [vmem:[%s3617_s5 + $0x38] sm:$0xff] }
 0x39e   :  { %2660 = vmatmul.msk.f32.vlgmr.msra.gmra.mxu2 %vm1349_vm13, %v2654_v44  ;;  %1843 = vmatpush.msrb.mxu1 %v3223_v37  ;;  %v3654_v37 = vperm.slane %v3020_v41, 3 }
 0x39f   :  { %1866 = vmatpush.msrb.mxu2 %v3225_v36  ;;  %1889 = vmatpush.msrb.mxu3 %v3239_v42  ;;  %v1910_v48 = vpop.permute.xlu1 %1909  ;;  %v2037_v42 = vpop.permute.xlu0 %2036 }
 0x3a0   :  { %v1913_v12 = vsel %vm713_vm6, %v1910_v48, %v1912_v27  ;;  %v1920_v36 = vmul.f32 %v1916_v17, %v3654_v37  ;;  %v2038_v50 = vsel %vm853_vm7, %v2035_v16, %v2037_v42  ;;  %v2287_v13 = vpop.permute.xlu2 %2286  ;;  %v3668_v37 = vperm.slane %v3151_v0, 1 }
 0x3a1   :  { %v1919_v49 = vmul.f32 %v1913_v12, %v3653_v25  ;;  %v2044_v34 = vmul.f32 %v2038_v50, %v3657_v53  ;;  %v3667_v25 = vperm.slane %v3151_v0, 0 }
 0x3a3   :  { %1991 = vmatpush.msra.mxu2 %v1919_v49 }
 0x3a4   :  { %2647 = vmatmul.msk.f32.gmra.mxu0 %vm1349_vm13, %v2645_v29  ;;  %2649 = vmatmul.msk.f32.gmra.mxu1 %vm1349_vm13, %v2645_v29  ;;  %v3663_v29 = vperm.slane %v3118_v35, 0  ;;  %v2685_v35 = vld [vmem:[%s3617_s5 + $0x68] sm:$0xff] }
 0x3a5   :  { %2662 = vmatmul.msk.f32.vlgmr.msra.gmra.mxu3 %vm1349_vm13, %v2654_v44 }
 0x3a6   :  { %2661 = vmatmul.msk.f32.gmra.mxu2 %vm1349_vm13, %v2655_v5  ;;  %2014 = vmatpush.msra.mxu3 %v1920_v36 }
 0x3a7   :  { %v1908_v38 = vpop.permute.xlu1 %1907  ;;  %v2160_v39 = vpop.permute.xlu0 %2159 }
 0x3a8   :  { %v1914_v24 = vsel %vm713_vm6, %v1908_v38, %v1910_v48  ;;  %v1915_v30 = vsel %vm713_vm6, %v1906_v56, %v1908_v38  ;;  %v3666_v56 = vperm.slane %v3151_v0, 3  ;;  %v2704_v0 = vld [vmem:[%s3617_s5 + $0x80] sm:$0xff]  ;;  %v2705_v38 = vld [vmem:[%s3617_s5 + $0x88] sm:$0xff] }
 0x3a9   :  { %v1917_v45 = vmul.f32 %v1915_v30, %v3655_v55  ;;  %v1918_v33 = vmul.f32 %v1914_v24, %v3656_v15 }
 0x3ac   :  { %2656 = vmatmul.msk.f32.vlgmr.msra.gmra.mxu0 %vm1349_vm13, %v2654_v44  ;;  %2658 = vmatmul.msk.f32.vlgmr.msra.gmra.mxu1 %vm1349_vm13, %v2654_v44 }
 0x3ad   :  { %2663 = vmatmul.msk.f32.gmra.mxu3 %vm1349_vm13, %v2655_v5  ;;  %1945 = vmatpush.msra.mxu0 %v1917_v45 }
 0x3ae   :  { %2670 = vmatmul.msk.f32.vlgmr.msrb.gmra.mxu2 %vm1349_vm13, %v2664_v18  ;;  %1968 = vmatpush.msra.mxu1 %v1918_v33 }
 0x3af   :  { %2116 = vmatpush.msrb.mxu2 %v2044_v34  ;;  %v2031_v41 = vpop.permute.xlu1 %2030  ;;  %v2158_v2 = vpop.permute.xlu0 %2157 }
 0x3b0   :  { %v2041_v28 = vsel %vm853_vm7, %v2037_v42, %v2031_v41  ;;  %v2040_v58 = vsel %vm853_vm7, %v2031_v41, %v2033_v57  ;;  %v2165_v26 = vsel %vm993_vm8, %v2156_v10, %v2158_v2  ;;  %v2164_v31 = vsel %vm993_vm8, %v2158_v2, %v2160_v39 }
 0x3b1   :  { %v2045_v43 = vmul.f32 %v2041_v28, %v3658_v32  ;;  %v2042_v3 = vmul.f32 %v2040_v58, %v3659_v60  ;;  %v2167_v51 = vmul.f32 %v2165_v26, %v3663_v29  ;;  %v2168_v59 = vmul.f32 %v2164_v31, %v3664_v63 }
 0x3b4   :  { %2657 = vmatmul.msk.f32.gmra.mxu0 %vm1349_vm13, %v2655_v5  ;;  %2659 = vmatmul.msk.f32.gmra.mxu1 %vm1349_vm13, %v2655_v5  ;;  %v2694_v5 = vld [vmem:[%s3617_s5 + $0x70] sm:$0xff] }
 0x3b5   :  { %2672 = vmatmul.msk.f32.vlgmr.msrb.gmra.mxu3 %vm1349_vm13, %v2664_v18 }
 0x3b6   :  { %2671 = vmatmul.msk.f32.gmra.mxu2 %vm1349_vm13, %v2665_v54  ;;  %2139 = vmatpush.msrb.mxu3 %v2045_v43 }
 0x3b7   :  { %v2162_v11 = vpop.permute.xlu1 %2161  ;;  %v2281_v1 = vpop.permute.xlu0 %2280 }
 0x3b8   :  { %v2163_v61 = vsel %vm993_vm8, %v2160_v39, %v2162_v11  ;;  %v2166_v6 = vsel %vm993_vm8, %v2162_v11, %v2156_v10  ;;  %v2291_v44 = vsel %vm1133_vm9, %v2287_v13, %v2281_v1 }
 0x3b9   :  { %v2169_v20 = vmul.f32 %v2163_v61, %v3660_v23  ;;  %v2170_v19 = vmul.f32 %v2166_v6, %v3662_v7  ;;  %v2295_v27 = vmul.f32 %v2291_v44, %v3666_v56 }
 0x3bc   :  { %2666 = vmatmul.msk.f32.vlgmr.msrb.gmra.mxu0 %vm1349_vm13, %v2664_v18  ;;  %2668 = vmatmul.msk.f32.vlgmr.msrb.gmra.mxu1 %vm1349_vm13, %v2664_v18 }
 0x3bd   :  { %2673 = vmatmul.msk.f32.gmra.mxu3 %vm1349_vm13, %v2665_v54  ;;  %2070 = vmatpush.msrb.mxu0 %v2042_v3 }
 0x3be   :  { %2680 = vmatmul.msk.f32.vlgmr.msra.gmra.mxu2 %vm1349_vm13, %v2674_v22  ;;  %2093 = vmatpush.msrb.mxu1 %v2043_v47 }
 0x3bf   :  { %2241 = vmatpush.msra.mxu2 %v2169_v20  ;;  %v2285_v9 = vpop.permute.xlu1 %2284 }
 0x3c0   :  { %v2288_v62 = vsel %vm1133_vm9, %v2285_v9, %v2287_v13 }
 0x3c1   :  { %v2294_v52 = vmul.f32 %v2288_v62, %v3665_v4 }
 0x3c4   :  { %2667 = vmatmul.msk.f32.gmra.mxu0 %vm1349_vm13, %v2665_v54  ;;  %2669 = vmatmul.msk.f32.gmra.mxu1 %vm1349_vm13, %v2665_v54 }
 0x3c5   :  { %2682 = vmatmul.msk.f32.vlgmr.msra.gmra.mxu3 %vm1349_vm13, %v2674_v22 }
 0x3c6   :  { %2681 = vmatmul.msk.f32.gmra.mxu2 %vm1349_vm13, %v2675_v8  ;;  %2264 = vmatpush.msra.mxu3 %v2170_v19 }
 0x3c7   :  { %v2283_v48 = vpop.permute.xlu1 %2282 }
 0x3c8   :  { %v2290_v12 = vsel %vm1133_vm9, %v2281_v1, %v2283_v48  ;;  %v2289_v17 = vsel %vm1133_vm9, %v2283_v48, %v2285_v9 }
 0x3c9   :  { %v2292_v49 = vmul.f32 %v2290_v12, %v3667_v25  ;;  %v2293_v36 = vmul.f32 %v2289_v17, %v3668_v37 }
 0x3cc   :  { %2676 = vmatmul.msk.f32.vlgmr.msra.gmra.mxu0 %vm1349_vm13, %v2674_v22  ;;  %2678 = vmatmul.msk.f32.vlgmr.msra.gmra.mxu1 %vm1349_vm13, %v2674_v22 }
 0x3cd   :  { %2683 = vmatmul.msk.f32.gmra.mxu3 %vm1349_vm13, %v2675_v8  ;;  %2195 = vmatpush.msra.mxu0 %v2167_v51 }
 0x3ce   :  { %2690 = vmatmul.msk.f32.vlgmr.msrb.gmra.mxu2 %vm1349_vm13, %v2684_v14  ;;  %2218 = vmatpush.msra.mxu1 %v2168_v59 }
 0x3cf   :  { %2366 = vmatpush.msrb.mxu2 %v2294_v52 }
 0x3d4   :  { %2677 = vmatmul.msk.f32.gmra.mxu0 %vm1349_vm13, %v2675_v8  ;;  %2679 = vmatmul.msk.f32.gmra.mxu1 %vm1349_vm13, %v2675_v8 }
 0x3d5   :  { %2692 = vmatmul.msk.f32.vlgmr.msrb.gmra.mxu3 %vm1349_vm13, %v2684_v14 }
 0x3d6   :  { %2691 = vmatmul.msk.f32.gmra.mxu2 %vm1349_vm13, %v2685_v35  ;;  %2389 = vmatpush.msrb.mxu3 %v2295_v27 }
 0x3dc   :  { %2686 = vmatmul.msk.f32.vlgmr.msrb.gmra.mxu0 %vm1349_vm13, %v2684_v14  ;;  %2688 = vmatmul.msk.f32.vlgmr.msrb.gmra.mxu1 %vm1349_vm13, %v2684_v14 }
 0x3dd   :  { %2693 = vmatmul.msk.f32.gmra.mxu3 %vm1349_vm13, %v2685_v35  ;;  %2320 = vmatpush.msrb.mxu0 %v2292_v49 }
 0x3de   :  { %2700 = vmatmul.msk.f32.vlgmr.msra.gmra.mxu2 %vm1349_vm13, %v2694_v5  ;;  %2343 = vmatpush.msrb.mxu1 %v2293_v36 }
 0x3e1   :  { %v1396_v30 = vpop.f32.mrf.mxu1 }
 0x3e4   :  { %2687 = vmatmul.msk.f32.gmra.mxu0 %vm1349_vm13, %v2685_v35  ;;  %2689 = vmatmul.msk.f32.gmra.mxu1 %vm1349_vm13, %v2685_v35 }
 0x3e5   :  { %2702 = vmatmul.msk.f32.vlgmr.msra.gmra.mxu3 %vm1349_vm13, %v2694_v5 }
 0x3e6   :  { %2701 = vmatmul.msk.f32.gmra.mxu2 %vm1349_vm13, %v2695_v46 }
 0x3e9   :  { %v1399_v50 = vpop.f32.mrf.mxu1 }
 0x3ec   :  { %2696 = vmatmul.msk.f32.vlgmr.msra.gmra.mxu0 %vm1349_vm13, %v2694_v5  ;;  %2698 = vmatmul.msk.f32.vlgmr.msra.gmra.mxu1 %vm1349_vm13, %v2694_v5 }
 0x3ed   :  { %2703 = vmatmul.msk.f32.gmra.mxu3 %vm1349_vm13, %v2695_v46 }
 0x3ee   :  { %2710 = vmatmul.msk.f32.vlgmr.msrb.gmra.mxu2 %vm1349_vm13, %v2704_v0 }
 0x3ef   :  { %v1419_v42 = vpop.f32.mrf.mxu2 }
 0x3f2   :  { %v1373_v24 = vpop.f32.mrf.mxu0 }
 0x3f4   :  { %2697 = vmatmul.msk.f32.gmra.mxu0 %vm1349_vm13, %v2695_v46  ;;  %2699 = vmatmul.msk.f32.gmra.mxu1 %vm1349_vm13, %v2695_v46 }
 0x3f5   :  { %2712 = vmatmul.msk.f32.vlgmr.msrb.gmra.mxu3 %vm1349_vm13, %v2704_v0 }
 0x3f6   :  { %2711 = vmatmul.msk.f32.gmra.mxu2 %vm1349_vm13, %v2705_v38 }
 0x3f7   :  { %v1422_v16 = vpop.f32.mrf.mxu2  ;;  %v1442_v55 = vpop.f32.mrf.mxu3 }
 0x3fa   :  { %v1376_v45 = vpop.f32.mrf.mxu0 }
 0x3fc   :  { %2706 = vmatmul.msk.f32.vlgmr.msrb.gmra.mxu0 %vm1349_vm13, %v2704_v0  ;;  %2708 = vmatmul.msk.f32.vlgmr.msrb.gmra.mxu1 %vm1349_vm13, %v2704_v0 }
 0x3fd   :  { %2713 = vmatmul.msk.f32.gmra.mxu3 %vm1349_vm13, %v2705_v38 }
 0x3ff   :  { %v1445_v15 = vpop.f32.mrf.mxu3  ;;  %v1517_v33 = vpop.f32.mrf.mxu2 }
 0x400   :  { %v1518_v18 = vadd.f32 %v1517_v33, %v1419_v42 }
 0x404   :  { %2707 = vmatmul.msk.f32.gmra.mxu0 %vm1349_vm13, %v2705_v38  ;;  %2709 = vmatmul.msk.f32.gmra.mxu1 %vm1349_vm13, %v2705_v38 }
 0x407   :  { %v1520_v53 = vpop.f32.mrf.mxu2  ;;  %v1540_v34 = vpop.f32.mrf.mxu3 }
 0x408   :  { %v1521_v41 = vadd.f32 %v1520_v53, %v1422_v16  ;;  %v1541_v28 = vadd.f32 %v1540_v34, %v1442_v55 }
 0x409   :  { %v1471_v32 = vpop.f32.mrf.mxu0  ;;  %v1494_v43 = vpop.f32.mrf.mxu1 }
 0x40a   :  { %v1472_v54 = vadd.f32 %v1471_v32, %v1373_v24  ;;  %v1495_v57 = vadd.f32 %v1494_v43, %v1396_v30 }
 0x410   :  { %v1543_v39 = vpop.f32.mrf.mxu3 }
 0x411   :  { %v1544_v11 = vadd.f32 %v1543_v39, %v1445_v15  ;;  %v1634_v58 = vpop.f32.mrf.mxu2  ;;  %v1474_v61 = vpop.f32.mrf.mxu0 }
 0x412   :  { %v1665_v21 = vadd.f32 %v1634_v58, %v1518_v18  ;;  %v1475_v60 = vadd.f32 %v1474_v61, %v1376_v45  ;;  %v1497_v3 = vpop.f32.mrf.mxu1 }
 0x413   :  { %v1498_v23 = vadd.f32 %v1497_v3, %v1399_v50 }
 0x418   :  { %v1657_v20 = vpop.f32.mrf.mxu3 }
 0x419   :  { %v1637_v22 = vpop.f32.mrf.mxu2  ;;  %v1666_v40 = vadd.f32 %v1657_v20, %v1541_v28  ;;  %v1588_v47 = vpop.f32.mrf.mxu0 }
 0x41a   :  { %v1669_v10 = vadd.f32 %v1637_v22, %v1521_v41  ;;  %v1663_v6 = vadd.f32 %v1588_v47, %v1472_v54  ;;  %v1611_v8 = vpop.f32.mrf.mxu1 }
 0x41b   :  { %v1664_v2 = vadd.f32 %v1611_v8, %v1495_v57 }
 0x420   :  { %v1660_v7 = vpop.f32.mrf.mxu3 }
 0x421   :  { %v1670_v19 = vadd.f32 %v1660_v7, %v1544_v11  ;;  %v1759_v9 = vpop.f32.mrf.mxu2  ;;  %v1591_v26 = vpop.f32.mrf.mxu0 }
 0x422   :  { %v1790_v13 = vadd.f32 %v1759_v9, %v1665_v21  ;;  %v1667_v31 = vadd.f32 %v1591_v26, %v1475_v60  ;;  %v1614_v62 = vpop.f32.mrf.mxu1 }
 0x423   :  { %v1668_v29 = vadd.f32 %v1614_v62, %v1498_v23 }
 0x428   :  { %v1782_v51 = vpop.f32.mrf.mxu3 }
 0x429   :  { %v1762_v14 = vpop.f32.mrf.mxu2  ;;  %v1791_v63 = vadd.f32 %v1782_v51, %v1666_v40  ;;  %v1713_v59 = vpop.f32.mrf.mxu0 }
 0x42a   :  { %v3551_v4 = vadd.f32 %v1762_v14, %v1669_v10  ;;  %v1788_v52 = vadd.f32 %v1713_v59, %v1663_v6  ;;  %v1736_v1 = vpop.f32.mrf.mxu1 }
 0x42b   :  { %v1789_v44 = vadd.f32 %v1736_v1, %v1664_v2 }
 0x430   :  { %v1785_v35 = vpop.f32.mrf.mxu3 }
 0x431   :  { %v3553_v56 = vadd.f32 %v1785_v35, %v1670_v19  ;;  %v1868_v27 = vpop.f32.mrf.mxu2  ;;  %v1716_v48 = vpop.f32.mrf.mxu0 }
 0x432   :  { %v1792_v12 = vadd.f32 %v1716_v48, %v1667_v31  ;;  %v1739_v17 = vpop.f32.mrf.mxu1  ;;  %v1899_v22 = vadd.f32 %v1868_v27, %v1790_v13 }
 0x433   :  { %v1793_v25 = vadd.f32 %v1739_v17, %v1668_v29 }
 0x438   :  { %v1891_v49 = vpop.f32.mrf.mxu3 }
 0x439   :  { %v1871_v5 = vpop.f32.mrf.mxu2  ;;  %v1822_v37 = vpop.f32.mrf.mxu0  ;;  %v1900_v10 = vadd.f32 %v1891_v49, %v1791_v63 }
 0x43a   :  { %v1845_v36 = vpop.f32.mrf.mxu1  ;;  %v1897_v60 = vadd.f32 %v1822_v37, %v1788_v52  ;;  %v1903_v13 = vadd.f32 %v1871_v5, %v3551_v4 }
 0x43b   :  { %v1898_v23 = vadd.f32 %v1845_v36, %v1789_v44 }
 0x440   :  { %v1894_v46 = vpop.f32.mrf.mxu3 }
 0x441   :  { %v1993_v0 = vpop.f32.mrf.mxu2  ;;  %v1825_v42 = vpop.f32.mrf.mxu0  ;;  %v1904_v49 = vadd.f32 %v1894_v46, %v3553_v56 }
 0x442   :  { %v1848_v38 = vpop.f32.mrf.mxu1  ;;  %v2024_v6 = vadd.f32 %v1993_v0, %v1899_v22  ;;  %v1901_v62 = vadd.f32 %v1825_v42, %v1792_v12 }
 0x443   :  { %v1902_v59 = vadd.f32 %v1848_v38, %v1793_v25 }
 0x448   :  { %v2016_v24 = vpop.f32.mrf.mxu3 }
 0x449   :  { %v1996_v30 = vpop.f32.mrf.mxu2  ;;  %v1947_v16 = vpop.f32.mrf.mxu0  ;;  %v2025_v19 = vadd.f32 %v2016_v24, %v1900_v10 }
 0x44a   :  { %v1970_v55 = vpop.f32.mrf.mxu1  ;;  %v2022_v20 = vadd.f32 %v1947_v16, %v1897_v60  ;;  %v2028_v36 = vadd.f32 %v1996_v30, %v1903_v13 }
 0x44b   :  { %v2023_v40 = vadd.f32 %v1970_v55, %v1898_v23 }
 0x450   :  { %v2019_v45 = vpop.f32.mrf.mxu3 }
 0x451   :  { %v2118_v50 = vpop.f32.mrf.mxu2  ;;  %v1950_v15 = vpop.f32.mrf.mxu0  ;;  %v2029_v16 = vadd.f32 %v2019_v45, %v1904_v49 }
 0x452   :  { %v1973_v33 = vpop.f32.mrf.mxu1  ;;  %v2149_v9 = vadd.f32 %v2118_v50, %v2024_v6  ;;  %v2026_v35 = vadd.f32 %v1950_v15, %v1901_v62 }
 0x453   :  { %v2027_v63 = vadd.f32 %v1973_v33, %v1902_v59 }
 0x458   :  { %v2141_v18 = vpop.f32.mrf.mxu3 }
 0x459   :  { %v2072_v53 = vpop.f32.mrf.mxu0  ;;  %v2121_v34 = vpop.f32.mrf.mxu2  ;;  %v2150_v52 = vadd.f32 %v2141_v18, %v2025_v19 }
 0x45a   :  { %v2095_v41 = vpop.f32.mrf.mxu1  ;;  %v2147_v47 = vadd.f32 %v2072_v53, %v2022_v20  ;;  %v2153_v25 = vadd.f32 %v2121_v34, %v2028_v36  ;;  %v1308_v36 = vld [vmem:[%s3618_s6] sm:$0xff] }
 0x45b   :  { %v2148_v8 = vadd.f32 %v2095_v41, %v2023_v40 }
 0x460   :  { %v2144_v28 = vpop.f32.mrf.mxu3 }
 0x461   :  { %v2075_v32 = vpop.f32.mrf.mxu0  ;;  %v2243_v54 = vpop.f32.mrf.mxu2  ;;  %v2154_v15 = vadd.f32 %v2144_v28, %v2029_v16 }
 0x462   :  { %v2098_v43 = vpop.f32.mrf.mxu1  ;;  %v2274_v1 = vadd.f32 %v2243_v54, %v2149_v9  ;;  %v2151_v37 = vadd.f32 %v2075_v32, %v2026_v35 }
 0x463   :  { %v2152_v0 = vadd.f32 %v2098_v43, %v2027_v63 }
 0x468   :  { %v2266_v57 = vpop.f32.mrf.mxu3 }
 0x469   :  { %v2197_v39 = vpop.f32.mrf.mxu0  ;;  %v2246_v58 = vpop.f32.mrf.mxu2  ;;  %v2275_v27 = vadd.f32 %v2266_v57, %v2150_v52  ;;  %v1311_v52 = vld [vmem:[%s3619_s7 + $0x8] sm:$0xff] }
 0x46a   :  { %v2220_v11 = vpop.f32.mrf.mxu1  ;;  %v2272_v2 = vadd.f32 %v2197_v39, %v2147_v47  ;;  %v2278_v33 = vadd.f32 %v2246_v58, %v2153_v25 }
 0x46b   :  { %v2273_v26 = vadd.f32 %v2220_v11, %v2148_v8 }
 0x470   :  { %v2269_v61 = vpop.f32.mrf.mxu3 }
 0x471   :  { %v2200_v21 = vpop.f32.mrf.mxu0  ;;  %v2368_v7 = vpop.f32.mrf.mxu2  ;;  %v2279_v56 = vadd.f32 %v2269_v61, %v2154_v15 }
 0x472   :  { %v2223_v3 = vpop.f32.mrf.mxu1  ;;  %v2399_v48 = vadd.f32 %v2368_v7, %v2274_v1  ;;  %v2276_v24 = vadd.f32 %v2200_v21, %v2151_v37 }
 0x473   :  { %v2277_v38 = vadd.f32 %v2223_v3, %v2152_v0 }
 0x478   :  { %v2391_v29 = vpop.f32.mrf.mxu3 }
 0x479   :  { %v2322_v31 = vpop.f32.mrf.mxu0  ;;  %v2400_v12 = vadd.f32 %v2391_v29, %v2275_v27  ;;  %v2371_v18 = vpop.f32.mrf.mxu2 }
 0x47a   :  { %v2397_v51 = vadd.f32 %v2322_v31, %v2272_v2  ;;  %v2345_v14 = vpop.f32.mrf.mxu1  ;;  %v2403_v46 = vadd.f32 %v2371_v18, %v2278_v33 }
 0x47b   :  { %v2398_v44 = vadd.f32 %v2345_v14, %v2273_v26  ;;  %v1310_v14 = vld [vmem:[%s3619_s7] sm:$0xff] }
 0x47d   :  { %v2405_v17 = vadd.f32 %v2398_v44, %v2397_v51 }
 0x47f   :  { %v2406_v42 = vadd.f32 %v2405_v17, %v2399_v48 }
 0x480   :  { %v2394_v41 = vpop.f32.mrf.mxu3 }
 0x481   :  { %v2325_v55 = vpop.f32.mrf.mxu0  ;;  %v2407_v50 = vadd.f32 %v2406_v42, %v2400_v12  ;;  %v2404_v32 = vadd.f32 %v2394_v41, %v2279_v56 }
 0x482   :  { %v2401_v4 = vadd.f32 %v2325_v55, %v2276_v24  ;;  %v2348_v5 = vpop.f32.mrf.mxu1 }
 0x483   :  { %v2402_v53 = vadd.f32 %v2348_v5, %v2277_v38  ;;  %2408 = vadd.xlane.f32.xlu2 %v2407_v50  ;;  %v1309_v38 = vld [vmem:[%s3618_s6 + $0x8] sm:$0xff]  ;;  %s2770_s6 = smov [#allocation2]  }
 0x484   :  { %s2525_s27 = sshll.u32 %s2770_s6, 4  ;;  %s2526_s27 = int_to_ptr.vmem [resolvable:$true] %s2525_s27 }
 0x485   :  { %v2410_v30 = vadd.f32 %v2402_v53, %v2401_v4 }
 0x487   :  { %v2411_v43 = vadd.f32 %v2410_v30, %v2403_v46 }
 0x489   :  { %v2412_v54 = vadd.f32 %v2411_v43, %v2404_v32 }
 0x48b   :  { %2413 = vadd.xlane.f32.xlu0 %v2412_v54 }
 0x4f6   :  { %v2409_v45 = vpop.xlane.xlu2 %2408 }
 0x4f7   :  { %v2415_v34 = vmul.f32 0.001953125, %v2409_v45 }
 0x4f9   :  { %v3557_v57 = vsub.f32 %v2397_v51, %v2415_v34  ;;  %v3559_v39 = vsub.f32 %v2398_v44, %v2415_v34  ;;  %v3561_v11 = vsub.f32 %v2399_v48, %v2415_v34  ;;  %v3563_v28 = vsub.f32 %v2400_v12, %v2415_v34 }
 0x4fb   :  { %v2425_v58 = vmul.f32 %v3557_v57, %v3557_v57  ;;  %v2426_v61 = vmul.f32 %v3559_v39, %v3559_v39  ;;  %v2427_v21 = vmul.f32 %v3561_v11, %v3561_v11  ;;  %v2428_v20 = vmul.f32 %v3563_v28, %v3563_v28 }
 0x4fd   :  { %v2433_v60 = vadd.f32 %v2426_v61, %v2425_v58 }
 0x4fe   :  { %v2414_v3 = vpop.xlane.xlu0 %2413 }
 0x4ff   :  { %v2416_v23 = vmul.f32 0.001953125, %v2414_v3  ;;  %v2434_v22 = vadd.f32 %v2433_v60, %v2427_v21 }
 0x501   :  { %v3573_v40 = vsub.f32 %v2401_v4, %v2416_v23  ;;  %v3575_v47 = vsub.f32 %v2402_v53, %v2416_v23  ;;  %v2435_v10 = vadd.f32 %v2434_v22, %v2428_v20  ;;  %v3577_v6 = vsub.f32 %v2403_v46, %v2416_v23 }
 0x502   :  { %v3579_v8 = vsub.f32 %v2404_v32, %v2416_v23 }
 0x503   :  { %2436 = vadd.xlane.f32.xlu1 %v2435_v10  ;;  %v2429_v2 = vmul.f32 %v3573_v40, %v3573_v40  ;;  %v2430_v7 = vmul.f32 %v3575_v47, %v3575_v47  ;;  %v2431_v19 = vmul.f32 %v3577_v6, %v3577_v6 }
 0x504   :  { %v2432_v26 = vmul.f32 %v3579_v8, %v3579_v8 }
 0x505   :  { %v2438_v9 = vadd.f32 %v2430_v7, %v2429_v2 }
 0x507   :  { %v2439_v31 = vadd.f32 %v2438_v9, %v2431_v19 }
 0x509   :  { %v2440_v62 = vadd.f32 %v2439_v31, %v2432_v26 }
 0x50b   :  { %2441 = vadd.xlane.f32.xlu2 %v2440_v62 }
 0x523   :  { %2489 = vperm.xlu2 %2728, %v1310_v14  }
 0x52b   :  { %2494 = vperm.xlu2 %2728, %v1311_v52  }
 0x576   :  { %v2437_v29 = vpop.xlane.xlu1 %2436 }
 0x577   :  { %v2443_v51 = vmul.f32 0.001953125, %v2437_v29 }
 0x579   :  { %v2445_v59 = vadd.f32 1e-05, %v2443_v51 }
 0x57b   :  { %2731 = vrsqrt.f32 %v2445_v59  ;;  %vm2453_vm15 = vweird.f32 %v2445_v59 }
 0x57e   :  { %v2442_v1 = vpop.xlane.xlu2 %2441 }
 0x57f   :  { %v2444_v44 = vmul.f32 0.001953125, %v2442_v1 }
 0x581   :  { %v2732_v13 = vpop.eup %2731  ;;  %v2446_v35 = vadd.f32 1e-05, %v2444_v44 }
 0x582   :  { %v2448_v63 = vmul.f32 %v2732_v13, %v2445_v59  ;;  %vm2454_vm14 = vweird.f32 %v2732_v13 }
 0x583   :  { %2733 = vrsqrt.f32 %v2446_v35  ;;  %vm2455_vm0 = vmor %vm2453_vm15, %vm2454_vm14  ;;  %vm2463_vm2 = vweird.f32 %v2446_v35 }
 0x584   :  { %v2449_v27 = vmul.f32 %v2732_v13, %v2448_v63 }
 0x586   :  { %v2450_v48 = vmul.f32 0.5, %v2449_v27  ;;  %v2490_v5 = vpop.permute.xlu2 %2489 }
 0x588   :  { %v2451_v17 = vsub.f32 1.5, %v2450_v48 }
 0x589   :  { %v2734_v49 = vpop.eup %2733 }
 0x58a   :  { %v2458_v37 = vmul.f32 %v2734_v49, %v2446_v35  ;;  %v2452_v0 = vmul.f32 %v2732_v13, %v2451_v17  ;;  %vm2464_vm1 = vweird.f32 %v2734_v49 }
 0x58b   :  { %vm2465_vm3 = vmor %vm2463_vm2, %vm2464_vm1 }
 0x58c   :  { %v2459_v12 = vmul.f32 %v2734_v49, %v2458_v37  ;;  %v2456_v42 = vsel %vm2455_vm0, %v2732_v13, %v2452_v0 }
 0x58d   :  { %v2467_v24 = vmul.f32 %v2456_v42, %v1308_v36 }
 0x58e   :  { %v2460_v16 = vmul.f32 0.5, %v2459_v12  ;;  %v2495_v61 = vpop.permute.xlu2 %2494 }
 0x58f   :  { %2471 = vperm.xlu0 %2727, %v2467_v24  }
 0x590   :  { %v2461_v25 = vsub.f32 1.5, %v2460_v16 }
 0x592   :  { %v2462_v55 = vmul.f32 %v2734_v49, %v2461_v25 }
 0x594   :  { %v2466_v50 = vsel %vm2465_vm3, %v2734_v49, %v2462_v55 }
 0x595   :  { %v2468_v18 = vmul.f32 %v2466_v50, %v1309_v38 }
 0x597   :  { %2476 = vperm.xlu1 %2726, %v2468_v18  }
 0x601   :  { %v2472_v4 = vpop.permute.xlu0 %2471 }
 0x602   :  { %v2479_v15 = vmul.f32 %v2472_v4, %v3557_v57  ;;  %v2480_v33 = vmul.f32 %v2472_v4, %v3559_v39  ;;  %v2481_v53 = vmul.f32 %v2472_v4, %v3561_v11  ;;  %v2482_v41 = vmul.f32 %v2472_v4, %v3563_v28 }
 0x604   :  { %v2497_v56 = vadd.f32 %v2490_v5, %v2479_v15  ;;  %v2498_v46 = vadd.f32 %v2490_v5, %v2480_v33  ;;  %v2499_v30 = vadd.f32 %v2490_v5, %v2481_v53  ;;  %v2500_v32 = vadd.f32 %v2490_v5, %v2482_v41 }
 0x606   :  { %v2505_v43 = vmax.f32 %v2497_v56, 0.0  ;;  %v2506_v54 = vmax.f32 %v2498_v46, 0.0  ;;  %v2507_v45 = vmax.f32 %v2499_v30, 0.0  ;;  %v2508_v34 = vmax.f32 %v2500_v32, 0.0 }
 0x608   :  { %2513 = vst [vmem:[#allocation2] sm:$0xff] %v2505_v43 }
 0x609   :  { %2514 = vst [vmem:[#allocation2 + $0x8] sm:$0xff] %v2506_v54  ;;  %v2477_v58 = vpop.permute.xlu1 %2476 }
 0x60a   :  { %2515 = vst [vmem:[#allocation2 + $0x10] sm:$0xff] %v2507_v45  ;;  %v2483_v57 = vmul.f32 %v2477_v58, %v3573_v40  ;;  %v2484_v39 = vmul.f32 %v2477_v58, %v3575_v47  ;;  %v2485_v11 = vmul.f32 %v2477_v58, %v3577_v6  ;;  %v2486_v28 = vmul.f32 %v2477_v58, %v3579_v8 }
 0x60b   :  { %2516 = vst [vmem:[#allocation2 + $0x18] sm:$0xff] %v2508_v34 }
 0x60c   :  { %v2501_v21 = vadd.f32 %v2495_v61, %v2483_v57  ;;  %v2502_v60 = vadd.f32 %v2495_v61, %v2484_v39  ;;  %v2503_v3 = vadd.f32 %v2495_v61, %v2485_v11  ;;  %v2504_v23 = vadd.f32 %v2495_v61, %v2486_v28 }
 0x60e   :  { %v2509_v20 = vmax.f32 %v2501_v21, 0.0  ;;  %v2510_v22 = vmax.f32 %v2502_v60, 0.0  ;;  %v2511_v40 = vmax.f32 %v2503_v3, 0.0  ;;  %v2512_v47 = vmax.f32 %v2504_v23, 0.0 }
 0x610   :  { %2517 = vst [vmem:[#allocation2 + $0x20] sm:$0xff] %v2509_v20 }
 0x611   :  { %2518 = vst [vmem:[#allocation2 + $0x28] sm:$0xff] %v2510_v22 }
 0x612   :  { %2519 = vst [vmem:[#allocation2 + $0x30] sm:$0xff] %v2511_v40 }
 0x613   :  { %2520 = vst [vmem:[#allocation2 + $0x38] sm:$0xff] %v2512_v47 }
 0x614   :  { %2533 = dma.vmem_to_hbm [thread:$0]  %s2526_s27, 1024, %s2528_s30, [#allocation3], %s2771_s1, %s2771_s1, %s2772_s16  }
 0x615   :  { %2759 = dma.done.wait [#allocation3], 1024  }
 0x616   :  { %2760 = vsyncadd [#allocation3], 4294966272 }
 0x617   :  { %2538 = vsyncpa [#allocation3], 1 }

</bundles_post_ra>
